<compile_context>
chip_gen: v5e
topology: v5e:2x2
jax: 0.10.0
libtpu: 0.0.40
codegen_flags: <defaults>
</compile_context>

<pallas_src>
import functools

import jax
import jax.numpy as jnp
from jax.experimental import pallas as pl
from jax.experimental.pallas import tpu as pltpu


# ----------------------------------------------------------------------------
# Kernel: one grid step = (one batch block, one transformer layer)
# ----------------------------------------------------------------------------
def _encoder_layers_kernel(heads, seq_len,
                           x_ref, bias_ref,
                           wqkv_ref, wfc_ref,
                           g1_ref, be1_ref, g2_ref, be2_ref,
                           w1_ref, b1_ref, w2_ref, b2_ref,
                           out_ref, act_ref):
    layer = pl.program_id(1)
    H, L = heads, seq_len
    R, E = act_ref.shape          # R = Nb * L rows, E on the lane axis
    D = E // H
    Nb = R // L

    # Layer 0: pull the input activation into the VMEM-resident scratch.
    @pl.when(layer == 0)
    def _():
        act_ref[...] = x_ref[...]

    x = act_ref[...]                                   # (R, E) f32
    x_bf = x.astype(jnp.bfloat16)

    # ---------------- Self-attention ----------------
    # One fused full-width QKV matmul (block-diagonal, pre-transposed,
    # 1/sqrt(E) folded into the Q columns).  bf16 operands, f32 accumulate.
    qkv = jnp.dot(x_bf, wqkv_ref[0], preferred_element_type=jnp.float32)   # (R, 3E)
    qkv_bf = qkv.astype(jnp.bfloat16)                  # single cast, sliced per head
    wfcT = wfc_ref[0]                                  # (E, E) bf16, pre-transposed

    per_batch = []
    for n in range(Nb):                                # static unroll, Nb is small
        r0 = n * L
        bias_n = bias_ref[n]                           # (1, L) additive key-mask bias
        acc = jnp.zeros((L, E), jnp.float32)
        for h in range(H):                             # static unroll over heads
            c0 = h * D
            q_h = qkv_bf[r0:r0 + L, c0:c0 + D]
            k_h = qkv_bf[r0:r0 + L, E + c0:E + c0 + D]
            v_h = qkv_bf[r0:r0 + L, 2 * E + c0:2 * E + c0 + D]
            # q_h @ k_h^T expressed through dimension_numbers (no in-kernel transpose)
            energy = jax.lax.dot_general(
                q_h, k_h, (((1,), (1,)), ((), ())),
                preferred_element_type=jnp.float32)                  # (L, L)
            energy = energy + bias_n                                 # masked keys -> -1e20/sqrt(E)
            m = jnp.max(energy, axis=-1, keepdims=True)
            p = jnp.exp(energy - m)
            att = p * pl.reciprocal(jnp.sum(p, axis=-1, keepdims=True), approx=True)
            o_h = jnp.dot(att.astype(jnp.bfloat16), v_h,
                          preferred_element_type=jnp.float32)        # (L, D)
            # fc_out applied per head (no concatenate): rows h*D:(h+1)*D of Wfc^T
            acc = acc + jnp.dot(o_h.astype(jnp.bfloat16), wfcT[c0:c0 + D, :],
                                preferred_element_type=jnp.float32)  # (L, E)
        per_batch.append(acc)
    attn = per_batch[0] if Nb == 1 else jnp.concatenate(per_batch, axis=0)  # (R, E)

    # ---------------- Residual + LayerNorm1 (f32) ----------------
    y = attn + x
    mu = jnp.mean(y, axis=-1, keepdims=True)
    var = jnp.mean((y - mu) ** 2, axis=-1, keepdims=True)
    y = (y - mu) * jax.lax.rsqrt(var + 1e-5) * g1_ref[0] + be1_ref[0]

    # ---------------- Feed-forward: Linear -> ReLU -> Linear ----------------
    h1 = jnp.dot(y.astype(jnp.bfloat16), w1_ref[0],
                 preferred_element_type=jnp.float32) + b1_ref[0]     # (R, F)
    h1 = jnp.maximum(h1, 0.0)
    ff = jnp.dot(h1.astype(jnp.bfloat16), w2_ref[0],
                 preferred_element_type=jnp.float32) + b2_ref[0]     # (R, E)

    # ---------------- Residual + LayerNorm2 (f32) ----------------
    z = ff + y
    mu2 = jnp.mean(z, axis=-1, keepdims=True)
    var2 = jnp.mean((z - mu2) ** 2, axis=-1, keepdims=True)
    z = (z - mu2) * jax.lax.rsqrt(var2 + 1e-5) * g2_ref[0] + be2_ref[0]

    act_ref[...] = z                                   # carried to the next layer

    @pl.when(layer == pl.num_programs(1) - 1)
    def _():
        out_ref[...] = z.astype(out_ref.dtype)


# ----------------------------------------------------------------------------
# Parameter init (torch layout) + fusion/stacking for the kernel
# ----------------------------------------------------------------------------
def init_encoder_params(key, src_vocab_size, embed_size, num_layers, heads,
                        forward_expansion, max_length):
    E = embed_size
    H = heads
    D = E // H
    assert D * H == E, "Embed size needs to be div by heads"
    F = forward_expansion * E
    keys = jax.random.split(key, 2 + num_layers)

    params = {
        "word_emb": 0.02 * jax.random.normal(keys[0], (src_vocab_size, E), jnp.float32),
        "pos_emb": 0.02 * jax.random.normal(keys[1], (max_length, E), jnp.float32),
        "layers": [],
    }
    for i in range(num_layers):
        k = jax.random.split(keys[2 + i], 6)
        params["layers"].append({
            "wq": jax.random.normal(k[0], (D, D), jnp.float32) / (D ** 0.5),
            "wk": jax.random.normal(k[1], (D, D), jnp.float32) / (D ** 0.5),
            "wv": jax.random.normal(k[2], (D, D), jnp.float32) / (D ** 0.5),
            "wfc": jax.random.normal(k[3], (E, E), jnp.float32) / (E ** 0.5),
            "g1": jnp.ones((E,), jnp.float32), "be1": jnp.zeros((E,), jnp.float32),
            "g2": jnp.ones((E,), jnp.float32), "be2": jnp.zeros((E,), jnp.float32),
            "w1": jax.random.normal(k[4], (F, E), jnp.float32) / (E ** 0.5),
            "b1": jnp.zeros((F,), jnp.float32),
            "w2": jax.random.normal(k[5], (E, F), jnp.float32) / (F ** 0.5),
            "b2": jnp.zeros((E,), jnp.float32),
        })

    # --- fuse / stack / pre-transpose for the kernel -------------------------
    inv_scale = 1.0 / (float(E) ** 0.5)
    eye_h = jnp.eye(H, dtype=jnp.float32)
    wqkv, wfc_t, w1_t, w2_t = [], [], [], []
    ln1_g, ln1_b, ln2_g, ln2_b, b1s, b2s = [], [], [], [], [], []
    for lp in params["layers"]:
        q_bd = jnp.kron(eye_h, lp["wq"].T) * inv_scale      # scale folded into Q
        k_bd = jnp.kron(eye_h, lp["wk"].T)
        v_bd = jnp.kron(eye_h, lp["wv"].T)
        wqkv.append(jnp.concatenate([q_bd, k_bd, v_bd], axis=1))   # (E, 3E)
        wfc_t.append(lp["wfc"].T)                                  # (E, E)
        w1_t.append(lp["w1"].T)                                    # (E, F)
        w2_t.append(lp["w2"].T)                                    # (F, E)
        ln1_g.append(lp["g1"]); ln1_b.append(lp["be1"])
        ln2_g.append(lp["g2"]); ln2_b.append(lp["be2"])
        b1s.append(lp["b1"]); b2s.append(lp["b2"])

    nl = num_layers
    params["fused"] = {
        "wqkv": jnp.stack(wqkv).astype(jnp.bfloat16),            # (nl, E, 3E)
        "wfc_t": jnp.stack(wfc_t).astype(jnp.bfloat16),          # (nl, E, E)
        "w1_t": jnp.stack(w1_t).astype(jnp.bfloat16),            # (nl, E, F)
        "w2_t": jnp.stack(w2_t).astype(jnp.bfloat16),            # (nl, F, E)
        "ln1_g": jnp.stack(ln1_g).reshape(nl, 1, E),
        "ln1_b": jnp.stack(ln1_b).reshape(nl, 1, E),
        "ln2_g": jnp.stack(ln2_g).reshape(nl, 1, E),
        "ln2_b": jnp.stack(ln2_b).reshape(nl, 1, E),
        "b1": jnp.stack(b1s).reshape(nl, 1, F),
        "b2": jnp.stack(b2s).reshape(nl, 1, E),
    }
    return params


# ----------------------------------------------------------------------------
# Wrapper: Encoder.forward
# ----------------------------------------------------------------------------
def encoder_forward(tokens, mask, params, heads, *, batch_block=None):
    """tokens: (N, L) int32; mask: (N, 1, L) with 1=keep, 0=mask (key positions)."""
    N, L = tokens.shape
    E = params["word_emb"].shape[1]
    fp = params["fused"]
    nl = fp["wqkv"].shape[0]
    F = fp["w1_t"].shape[-1]

    # Embeddings (gather) stay in plain JAX; dropout is identity in eval mode.
    x = jnp.take(params["word_emb"], tokens, axis=0) + params["pos_emb"][None, :L, :]
    x2d = x.reshape(N * L, E).astype(jnp.float32)

    # Additive mask bias with the 1/sqrt(E) scale folded in — exactly matches
    # torch's masked_fill(mask == 0, -1e20) followed by division by sqrt(E).
    inv_scale = 1.0 / (float(E) ** 0.5)
    bias = jnp.where(mask == 0, jnp.float32(-1e20) * inv_scale,
                     jnp.float32(0.0)).astype(jnp.float32)          # (N, 1, L)

    Nb = N if batch_block is None else batch_block
    assert N % Nb == 0
    num_b = N // Nb

    kernel = functools.partial(_encoder_layers_kernel, heads, L)

    out2d = pl.pallas_call(
        kernel,
        out_shape=jax.ShapeDtypeStruct((N * L, E), jnp.float32),
        grid=(num_b, nl),
        in_specs=[
            pl.BlockSpec((Nb * L, E), lambda b, l: (b, 0)),        # x (read at layer 0)
            pl.BlockSpec((Nb, 1, L), lambda b, l: (b, 0, 0)),      # additive mask bias
            pl.BlockSpec((1, E, 3 * E), lambda b, l: (l, 0, 0)),   # fused QKV (block-diag, pre-T)
            pl.BlockSpec((1, E, E), lambda b, l: (l, 0, 0)),       # fc_out^T
            pl.BlockSpec((1, 1, E), lambda b, l: (l, 0, 0)),       # ln1 gamma
            pl.BlockSpec((1, 1, E), lambda b, l: (l, 0, 0)),       # ln1 beta
            pl.BlockSpec((1, 1, E), lambda b, l: (l, 0, 0)),       # ln2 gamma
            pl.BlockSpec((1, 1, E), lambda b, l: (l, 0, 0)),       # ln2 beta
            pl.BlockSpec((1, E, F), lambda b, l: (l, 0, 0)),       # w1^T
            pl.BlockSpec((1, 1, F), lambda b, l: (l, 0, 0)),       # b1
            pl.BlockSpec((1, F, E), lambda b, l: (l, 0, 0)),       # w2^T
            pl.BlockSpec((1, 1, E), lambda b, l: (l, 0, 0)),       # b2
        ],
        out_specs=pl.BlockSpec((Nb * L, E), lambda b, l: (b, 0)),  # written at last layer
        scratch_shapes=[pltpu.VMEM((Nb * L, E), jnp.float32)],     # resident activation
        compiler_params=pltpu.CompilerParams(
            dimension_semantics=("parallel", "arbitrary"),
            vmem_limit_bytes=32 * 1024 * 1024),
    )(x2d, bias,
      fp["wqkv"], fp["wfc_t"],
      fp["ln1_g"], fp["ln1_b"], fp["ln2_g"], fp["ln2_b"],
      fp["w1_t"], fp["b1"], fp["w2_t"], fp["b2"])

    return out2d.reshape(N, L, E)


# ----------------------------------------------------------------------------
# Pure-JAX reference (mirrors the torch module in f32) for a sanity check
# ----------------------------------------------------------------------------
def encoder_reference(tokens, mask, params, heads):
    N, L = tokens.shape
    E = params["word_emb"].shape[1]
    D = E // heads
    x = jnp.take(params["word_emb"], tokens, axis=0) + params["pos_emb"][None, :L, :]
    for lp in params["layers"]:
        xh = x.reshape(N, L, heads, D)
        q = jnp.einsum("nlhd,od->nlho", xh, lp["wq"])
        k = jnp.einsum("nlhd,od->nlho", xh, lp["wk"])
        v = jnp.einsum("nlhd,od->nlho", xh, lp["wv"])
        energy = jnp.einsum("nqho,nkho->nhqk", q, k)
        energy = jnp.where(mask[:, None, :, :] == 0, jnp.float32(-1e20), energy)
        att = jax.nn.softmax(energy / (float(E) ** 0.5), axis=-1)
        o = jnp.einsum("nhqk,nkhd->nqhd", att, v).reshape(N, L, E)
        attn = o @ lp["wfc"].T

        y = attn + x
        mu = jnp.mean(y, -1, keepdims=True)
        var = jnp.mean((y - mu) ** 2, -1, keepdims=True)
        y = (y - mu) * jax.lax.rsqrt(var + 1e-5) * lp["g1"] + lp["be1"]

        h1 = jnp.maximum(y @ lp["w1"].T + lp["b1"], 0.0)
        ff = h1 @ lp["w2"].T + lp["b2"]
        z = ff + y
        mu2 = jnp.mean(z, -1, keepdims=True)
        var2 = jnp.mean((z - mu2) ** 2, -1, keepdims=True)
        x = (z - mu2) * jax.lax.rsqrt(var2 + 1e-5) * lp["g2"] + lp["be2"]
    return x


if __name__ == "__main__":
    src_vocab_size = 50
    embed_size = 32
    num_layers = 2
    heads = 4
    forward_expansion = 4
    max_length = 16
    N, L = 2, 8

    key = jax.random.PRNGKey(0)
    kp, kt = jax.random.split(key)
    params = init_encoder_params(kp, src_vocab_size, embed_size, num_layers,
                                 heads, forward_expansion, max_length)

    tokens = jax.random.randint(kt, (N, L), 0, src_vocab_size, dtype=jnp.int32)
    mask = jnp.ones((N, 1, L), jnp.float32)
    mask = mask.at[1, 0, 6:].set(0.0)        # pad out last 2 key positions of batch 1

    out = encoder_forward(tokens, mask, params, heads)
    jax.block_until_ready(out)

    assert out.shape == (N, L, embed_size)
    assert bool(jnp.all(jnp.isfinite(out)))

    # loose tolerance: kernel uses bf16 MXU operands + approx reciprocal
    ref = encoder_reference(tokens, mask, params, heads)
    max_err = float(jnp.max(jnp.abs(out - ref)))
    assert max_err < 0.3, f"kernel deviates from reference: max abs err {max_err}"

    print("KERNEL_OK")
</pallas_src>

<mosaic_0001>
module attributes {stable_mosaic.version = 11 : i64} {
  func.func @_encoder_layers_kernel(%arg0: i32, %arg1: i32, %arg2: memref<16x32xf32, #tpu.memory_space<vmem>>, %arg3: memref<2x1x8xf32, #tpu.memory_space<vmem>>, %arg4: memref<1x32x96xbf16, #tpu.memory_space<vmem>>, %arg5: memref<1x32x32xbf16, #tpu.memory_space<vmem>>, %arg6: memref<1x1x32xf32, #tpu.memory_space<vmem>>, %arg7: memref<1x1x32xf32, #tpu.memory_space<vmem>>, %arg8: memref<1x1x32xf32, #tpu.memory_space<vmem>>, %arg9: memref<1x1x32xf32, #tpu.memory_space<vmem>>, %arg10: memref<1x32x128xbf16, #tpu.memory_space<vmem>>, %arg11: memref<1x1x128xf32, #tpu.memory_space<vmem>>, %arg12: memref<1x128x32xbf16, #tpu.memory_space<vmem>>, %arg13: memref<1x1x32xf32, #tpu.memory_space<vmem>>, %arg14: memref<16x32xf32, #tpu.memory_space<vmem>>, %arg15: memref<16x32xf32, #tpu.memory_space<vmem>>) attributes {dimension_semantics = [#tpu.dimension_semantics<parallel>, #tpu.dimension_semantics<arbitrary>], iteration_bounds = array<i64: 1, 2>, scalar_prefetch = 0 : i64, scratch_operands = 1 : i64, tpu.core_type = #tpu.core_type<tc>, window_params = [{transform_indices = @transform_0, window_bounds = array<i64: 16, 32>}, {transform_indices = @transform_1, window_bounds = array<i64: 2, 1, 8>}, {transform_indices = @transform_2, window_bounds = array<i64: 1, 32, 96>}, {transform_indices = @transform_3, window_bounds = array<i64: 1, 32, 32>}, {transform_indices = @transform_4, window_bounds = array<i64: 1, 1, 32>}, {transform_indices = @transform_5, window_bounds = array<i64: 1, 1, 32>}, {transform_indices = @transform_6, window_bounds = array<i64: 1, 1, 32>}, {transform_indices = @transform_7, window_bounds = array<i64: 1, 1, 32>}, {transform_indices = @transform_8, window_bounds = array<i64: 1, 32, 128>}, {transform_indices = @transform_9, window_bounds = array<i64: 1, 1, 128>}, {transform_indices = @transform_10, window_bounds = array<i64: 1, 128, 32>}, {transform_indices = @transform_11, window_bounds = array<i64: 1, 1, 32>}, {transform_indices = @transform_12, window_bounds = array<i64: 16, 32>}]} {
    %c0_i32 = arith.constant 0 : i32
    %0 = arith.cmpi eq, %arg1, %c0_i32 : i32
    %1 = arith.extui %0 : i1 to i32
    %c0_i32_0 = arith.constant 0 : i32
    %2 = arith.cmpi ne, %1, %c0_i32_0 : i32
    scf.if %2 {
      %c0_95 = arith.constant 0 : index
      %c0_96 = arith.constant 0 : index
      %270 = vector.load %arg2[%c0_95, %c0_96] : memref<16x32xf32, #tpu.memory_space<vmem>>, vector<16x32xf32>
      %c0_97 = arith.constant 0 : index
      %c0_98 = arith.constant 0 : index
      %271 = vector.load %arg15[%c0_97, %c0_98] : memref<16x32xf32, #tpu.memory_space<vmem>>, vector<16x32xf32>
      tpu.vector_store %arg15[%c0_97, %c0_98], %270 {strides = array<i32>} : memref<16x32xf32, #tpu.memory_space<vmem>>, vector<16x32xf32>,
    } else {
    }
    %c0 = arith.constant 0 : index
    %c0_1 = arith.constant 0 : index
    %3 = vector.load %arg15[%c0, %c0_1] : memref<16x32xf32, #tpu.memory_space<vmem>>, vector<16x32xf32>
    %4 = arith.truncf %3 : vector<16x32xf32> to vector<16x32xbf16>
    %c0_2 = arith.constant 0 : index
    %c0_3 = arith.constant 0 : index
    %c0_4 = arith.constant 0 : index
    %5 = vector.load %arg4[%c0_2, %c0_3, %c0_4] : memref<1x32x96xbf16, #tpu.memory_space<vmem>>, vector<1x32x96xbf16>
    %6 = vector.shape_cast %5 : vector<1x32x96xbf16> to vector<32x96xbf16>
    %cst = arith.constant dense<0.000000e+00> : vector<16x96xf32>
    %7 = tpu.matmul %4, %6, %cst {dimension_numbers = #tpu.dot_dimension_numbers<[1], [0], [0], [1], [0, 0, 1, 1], [], []>} : vector<16x32xbf16>, vector<32x96xbf16>, vector<16x96xf32> -> vector<16x96xf32>
    %8 = arith.truncf %7 : vector<16x96xf32> to vector<16x96xbf16>
    %c0_5 = arith.constant 0 : index
    %c0_6 = arith.constant 0 : index
    %c0_7 = arith.constant 0 : index
    %9 = vector.load %arg5[%c0_5, %c0_6, %c0_7] : memref<1x32x32xbf16, #tpu.memory_space<vmem>>, vector<1x32x32xbf16>
    %10 = vector.shape_cast %9 : vector<1x32x32xbf16> to vector<32x32xbf16>
    %c0_8 = arith.constant 0 : index
    %c0_9 = arith.constant 0 : index
    %c0_10 = arith.constant 0 : index
    %11 = vector.load %arg3[%c0_8, %c0_9, %c0_10] : memref<2x1x8xf32, #tpu.memory_space<vmem>>, vector<1x1x8xf32>
    %12 = vector.shape_cast %11 : vector<1x1x8xf32> to vector<1x8xf32>
    %cst_11 = arith.constant 0.000000e+00 : f32
    %13 = vector.broadcast %cst_11 : f32 to vector<8x32xf32>
    %14 = vector.extract_strided_slice %8 {offsets = [0, 0], sizes = [8, 8], strides = [1, 1]} : vector<16x96xbf16> to vector<8x8xbf16>
    %15 = vector.extract_strided_slice %8 {offsets = [0, 32], sizes = [8, 8], strides = [1, 1]} : vector<16x96xbf16> to vector<8x8xbf16>
    %16 = vector.extract_strided_slice %8 {offsets = [0, 64], sizes = [8, 8], strides = [1, 1]} : vector<16x96xbf16> to vector<8x8xbf16>
    %cst_12 = arith.constant dense<0.000000e+00> : vector<8x8xf32>
    %17 = tpu.matmul %14, %15, %cst_12 {dimension_numbers = #tpu.dot_dimension_numbers<[1], [1], [0], [0], [0, 0, 1, 0], [], []>} : vector<8x8xbf16>, vector<8x8xbf16>, vector<8x8xf32> -> vector<8x8xf32>
    %18 = vector.broadcast %12 : vector<1x8xf32> to vector<8x8xf32>
    %19 = arith.addf %17, %18 : vector<8x8xf32>
    %cst_13 = arith.constant dense<0xFF800000> : vector<8xf32>
    %20 = vector.multi_reduction <maximumf>, %19, %cst_13 [1] : vector<8x8xf32> to vector<8xf32>
    %21 = vector.shape_cast %20 : vector<8xf32> to vector<8x1xf32>
    %22 = vector.broadcast %21 : vector<8x1xf32> to vector<8x8xf32>
    %23 = arith.subf %19, %22 : vector<8x8xf32>
    %24 = math.exp %23 : vector<8x8xf32>
    %cst_14 = arith.constant dense<0.000000e+00> : vector<8xf32>
    %25 = vector.multi_reduction <add>, %24, %cst_14 [1] : vector<8x8xf32> to vector<8xf32>
    %26 = vector.shape_cast %25 : vector<8xf32> to vector<8x1xf32>
    %27 = tpu.reciprocal %26 {approx = true} : vector<8x1xf32> -> vector<8x1xf32>
    %28 = vector.broadcast %27 : vector<8x1xf32> to vector<8x8xf32>
    %29 = arith.mulf %24, %28 : vector<8x8xf32>
    %30 = arith.truncf %29 : vector<8x8xf32> to vector<8x8xbf16>
    %cst_15 = arith.constant dense<0.000000e+00> : vector<8x8xf32>
    %31 = tpu.matmul %30, %16, %cst_15 {dimension_numbers = #tpu.dot_dimension_numbers<[1], [0], [0], [1], [0, 0, 1, 1], [], []>} : vector<8x8xbf16>, vector<8x8xbf16>, vector<8x8xf32> -> vector<8x8xf32>
    %32 = arith.truncf %31 : vector<8x8xf32> to vector<8x8xbf16>
    %33 = vector.extract_strided_slice %10 {offsets = [0, 0], sizes = [8, 32], strides = [1, 1]} : vector<32x32xbf16> to vector<8x32xbf16>
    %cst_16 = arith.constant dense<0.000000e+00> : vector<8x32xf32>
    %34 = tpu.matmul %32, %33, %cst_16 {dimension_numbers = #tpu.dot_dimension_numbers<[1], [0], [0], [1], [0, 0, 1, 1], [], []>} : vector<8x8xbf16>, vector<8x32xbf16>, vector<8x32xf32> -> vector<8x32xf32>
    %35 = arith.addf %13, %34 : vector<8x32xf32>
    %36 = vector.extract_strided_slice %8 {offsets = [0, 8], sizes = [8, 8], strides = [1, 1]} : vector<16x96xbf16> to vector<8x8xbf16>
    %37 = vector.extract_strided_slice %8 {offsets = [0, 40], sizes = [8, 8], strides = [1, 1]} : vector<16x96xbf16> to vector<8x8xbf16>
    %38 = vector.extract_strided_slice %8 {offsets = [0, 72], sizes = [8, 8], strides = [1, 1]} : vector<16x96xbf16> to vector<8x8xbf16>
    %cst_17 = arith.constant dense<0.000000e+00> : vector<8x8xf32>
    %39 = tpu.matmul %36, %37, %cst_17 {dimension_numbers = #tpu.dot_dimension_numbers<[1], [1], [0], [0], [0, 0, 1, 0], [], []>} : vector<8x8xbf16>, vector<8x8xbf16>, vector<8x8xf32> -> vector<8x8xf32>
    %40 = vector.broadcast %12 : vector<1x8xf32> to vector<8x8xf32>
    %41 = arith.addf %39, %40 : vector<8x8xf32>
    %cst_18 = arith.constant dense<0xFF800000> : vector<8xf32>
    %42 = vector.multi_reduction <maximumf>, %41, %cst_18 [1] : vector<8x8xf32> to vector<8xf32>
    %43 = vector.shape_cast %42 : vector<8xf32> to vector<8x1xf32>
    %44 = vector.broadcast %43 : vector<8x1xf32> to vector<8x8xf32>
    %45 = arith.subf %41, %44 : vector<8x8xf32>
    %46 = math.exp %45 : vector<8x8xf32>
    %cst_19 = arith.constant dense<0.000000e+00> : vector<8xf32>
    %47 = vector.multi_reduction <add>, %46, %cst_19 [1] : vector<8x8xf32> to vector<8xf32>
    %48 = vector.shape_cast %47 : vector<8xf32> to vector<8x1xf32>
    %49 = tpu.reciprocal %48 {approx = true} : vector<8x1xf32> -> vector<8x1xf32>
    %50 = vector.broadcast %49 : vector<8x1xf32> to vector<8x8xf32>
    %51 = arith.mulf %46, %50 : vector<8x8xf32>
    %52 = arith.truncf %51 : vector<8x8xf32> to vector<8x8xbf16>
    %cst_20 = arith.constant dense<0.000000e+00> : vector<8x8xf32>
    %53 = tpu.matmul %52, %38, %cst_20 {dimension_numbers = #tpu.dot_dimension_numbers<[1], [0], [0], [1], [0, 0, 1, 1], [], []>} : vector<8x8xbf16>, vector<8x8xbf16>, vector<8x8xf32> -> vector<8x8xf32>
    %54 = arith.truncf %53 : vector<8x8xf32> to vector<8x8xbf16>
    %55 = vector.extract_strided_slice %10 {offsets = [8, 0], sizes = [8, 32], strides = [1, 1]} : vector<32x32xbf16> to vector<8x32xbf16>
    %cst_21 = arith.constant dense<0.000000e+00> : vector<8x32xf32>
    %56 = tpu.matmul %54, %55, %cst_21 {dimension_numbers = #tpu.dot_dimension_numbers<[1], [0], [0], [1], [0, 0, 1, 1], [], []>} : vector<8x8xbf16>, vector<8x32xbf16>, vector<8x32xf32> -> vector<8x32xf32>
    %57 = arith.addf %35, %56 : vector<8x32xf32>
    %58 = vector.extract_strided_slice %8 {offsets = [0, 16], sizes = [8, 8], strides = [1, 1]} : vector<16x96xbf16> to vector<8x8xbf16>
    %59 = vector.extract_strided_slice %8 {offsets = [0, 48], sizes = [8, 8], strides = [1, 1]} : vector<16x96xbf16> to vector<8x8xbf16>
    %60 = vector.extract_strided_slice %8 {offsets = [0, 80], sizes = [8, 8], strides = [1, 1]} : vector<16x96xbf16> to vector<8x8xbf16>
    %cst_22 = arith.constant dense<0.000000e+00> : vector<8x8xf32>
    %61 = tpu.matmul %58, %59, %cst_22 {dimension_numbers = #tpu.dot_dimension_numbers<[1], [1], [0], [0], [0, 0, 1, 0], [], []>} : vector<8x8xbf16>, vector<8x8xbf16>, vector<8x8xf32> -> vector<8x8xf32>
    %62 = vector.broadcast %12 : vector<1x8xf32> to vector<8x8xf32>
    %63 = arith.addf %61, %62 : vector<8x8xf32>
    %cst_23 = arith.constant dense<0xFF800000> : vector<8xf32>
    %64 = vector.multi_reduction <maximumf>, %63, %cst_23 [1] : vector<8x8xf32> to vector<8xf32>
    %65 = vector.shape_cast %64 : vector<8xf32> to vector<8x1xf32>
    %66 = vector.broadcast %65 : vector<8x1xf32> to vector<8x8xf32>
    %67 = arith.subf %63, %66 : vector<8x8xf32>
    %68 = math.exp %67 : vector<8x8xf32>
    %cst_24 = arith.constant dense<0.000000e+00> : vector<8xf32>
    %69 = vector.multi_reduction <add>, %68, %cst_24 [1] : vector<8x8xf32> to vector<8xf32>
    %70 = vector.shape_cast %69 : vector<8xf32> to vector<8x1xf32>
    %71 = tpu.reciprocal %70 {approx = true} : vector<8x1xf32> -> vector<8x1xf32>
    %72 = vector.broadcast %71 : vector<8x1xf32> to vector<8x8xf32>
    %73 = arith.mulf %68, %72 : vector<8x8xf32>
    %74 = arith.truncf %73 : vector<8x8xf32> to vector<8x8xbf16>
    %cst_25 = arith.constant dense<0.000000e+00> : vector<8x8xf32>
    %75 = tpu.matmul %74, %60, %cst_25 {dimension_numbers = #tpu.dot_dimension_numbers<[1], [0], [0], [1], [0, 0, 1, 1], [], []>} : vector<8x8xbf16>, vector<8x8xbf16>, vector<8x8xf32> -> vector<8x8xf32>
    %76 = arith.truncf %75 : vector<8x8xf32> to vector<8x8xbf16>
    %77 = vector.extract_strided_slice %10 {offsets = [16, 0], sizes = [8, 32], strides = [1, 1]} : vector<32x32xbf16> to vector<8x32xbf16>
    %cst_26 = arith.constant dense<0.000000e+00> : vector<8x32xf32>
    %78 = tpu.matmul %76, %77, %cst_26 {dimension_numbers = #tpu.dot_dimension_numbers<[1], [0], [0], [1], [0, 0, 1, 1], [], []>} : vector<8x8xbf16>, vector<8x32xbf16>, vector<8x32xf32> -> vector<8x32xf32>
    %79 = arith.addf %57, %78 : vector<8x32xf32>
    %80 = vector.extract_strided_slice %8 {offsets = [0, 24], sizes = [8, 8], strides = [1, 1]} : vector<16x96xbf16> to vector<8x8xbf16>
    %81 = vector.extract_strided_slice %8 {offsets = [0, 56], sizes = [8, 8], strides = [1, 1]} : vector<16x96xbf16> to vector<8x8xbf16>
    %82 = vector.extract_strided_slice %8 {offsets = [0, 88], sizes = [8, 8], strides = [1, 1]} : vector<16x96xbf16> to vector<8x8xbf16>
    %cst_27 = arith.constant dense<0.000000e+00> : vector<8x8xf32>
    %83 = tpu.matmul %80, %81, %cst_27 {dimension_numbers = #tpu.dot_dimension_numbers<[1], [1], [0], [0], [0, 0, 1, 0], [], []>} : vector<8x8xbf16>, vector<8x8xbf16>, vector<8x8xf32> -> vector<8x8xf32>
    %84 = vector.broadcast %12 : vector<1x8xf32> to vector<8x8xf32>
    %85 = arith.addf %83, %84 : vector<8x8xf32>
    %cst_28 = arith.constant dense<0xFF800000> : vector<8xf32>
    %86 = vector.multi_reduction <maximumf>, %85, %cst_28 [1] : vector<8x8xf32> to vector<8xf32>
    %87 = vector.shape_cast %86 : vector<8xf32> to vector<8x1xf32>
    %88 = vector.broadcast %87 : vector<8x1xf32> to vector<8x8xf32>
    %89 = arith.subf %85, %88 : vector<8x8xf32>
    %90 = math.exp %89 : vector<8x8xf32>
    %cst_29 = arith.constant dense<0.000000e+00> : vector<8xf32>
    %91 = vector.multi_reduction <add>, %90, %cst_29 [1] : vector<8x8xf32> to vector<8xf32>
    %92 = vector.shape_cast %91 : vector<8xf32> to vector<8x1xf32>
    %93 = tpu.reciprocal %92 {approx = true} : vector<8x1xf32> -> vector<8x1xf32>
    %94 = vector.broadcast %93 : vector<8x1xf32> to vector<8x8xf32>
    %95 = arith.mulf %90, %94 : vector<8x8xf32>
    %96 = arith.truncf %95 : vector<8x8xf32> to vector<8x8xbf16>
    %cst_30 = arith.constant dense<0.000000e+00> : vector<8x8xf32>
    %97 = tpu.matmul %96, %82, %cst_30 {dimension_numbers = #tpu.dot_dimension_numbers<[1], [0], [0], [1], [0, 0, 1, 1], [], []>} : vector<8x8xbf16>, vector<8x8xbf16>, vector<8x8xf32> -> vector<8x8xf32>
    %98 = arith.truncf %97 : vector<8x8xf32> to vector<8x8xbf16>
    %99 = vector.extract_strided_slice %10 {offsets = [24, 0], sizes = [8, 32], strides = [1, 1]} : vector<32x32xbf16> to vector<8x32xbf16>
    %cst_31 = arith.constant dense<0.000000e+00> : vector<8x32xf32>
    %100 = tpu.matmul %98, %99, %cst_31 {dimension_numbers = #tpu.dot_dimension_numbers<[1], [0], [0], [1], [0, 0, 1, 1], [], []>} : vector<8x8xbf16>, vector<8x32xbf16>, vector<8x32xf32> -> vector<8x32xf32>
    %101 = arith.addf %79, %100 : vector<8x32xf32>
    %c1 = arith.constant 1 : index
    %c0_32 = arith.constant 0 : index
    %c0_33 = arith.constant 0 : index
    %102 = vector.load %arg3[%c1, %c0_32, %c0_33] : memref<2x1x8xf32, #tpu.memory_space<vmem>>, vector<1x1x8xf32>
    %103 = vector.shape_cast %102 : vector<1x1x8xf32> to vector<1x8xf32>
    %cst_34 = arith.constant 0.000000e+00 : f32
    %104 = vector.broadcast %cst_34 : f32 to vector<8x32xf32>
    %105 = vector.extract_strided_slice %8 {offsets = [8, 0], sizes = [8, 8], strides = [1, 1]} : vector<16x96xbf16> to vector<8x8xbf16>
    %106 = vector.extract_strided_slice %8 {offsets = [8, 32], sizes = [8, 8], strides = [1, 1]} : vector<16x96xbf16> to vector<8x8xbf16>
    %107 = vector.extract_strided_slice %8 {offsets = [8, 64], sizes = [8, 8], strides = [1, 1]} : vector<16x96xbf16> to vector<8x8xbf16>
    %cst_35 = arith.constant dense<0.000000e+00> : vector<8x8xf32>
    %108 = tpu.matmul %105, %106, %cst_35 {dimension_numbers = #tpu.dot_dimension_numbers<[1], [1], [0], [0], [0, 0, 1, 0], [], []>} : vector<8x8xbf16>, vector<8x8xbf16>, vector<8x8xf32> -> vector<8x8xf32>
    %109 = vector.broadcast %103 : vector<1x8xf32> to vector<8x8xf32>
    %110 = arith.addf %108, %109 : vector<8x8xf32>
    %cst_36 = arith.constant dense<0xFF800000> : vector<8xf32>
    %111 = vector.multi_reduction <maximumf>, %110, %cst_36 [1] : vector<8x8xf32> to vector<8xf32>
    %112 = vector.shape_cast %111 : vector<8xf32> to vector<8x1xf32>
    %113 = vector.broadcast %112 : vector<8x1xf32> to vector<8x8xf32>
    %114 = arith.subf %110, %113 : vector<8x8xf32>
    %115 = math.exp %114 : vector<8x8xf32>
    %cst_37 = arith.constant dense<0.000000e+00> : vector<8xf32>
    %116 = vector.multi_reduction <add>, %115, %cst_37 [1] : vector<8x8xf32> to vector<8xf32>
    %117 = vector.shape_cast %116 : vector<8xf32> to vector<8x1xf32>
    %118 = tpu.reciprocal %117 {approx = true} : vector<8x1xf32> -> vector<8x1xf32>
    %119 = vector.broadcast %118 : vector<8x1xf32> to vector<8x8xf32>
    %120 = arith.mulf %115, %119 : vector<8x8xf32>
    %121 = arith.truncf %120 : vector<8x8xf32> to vector<8x8xbf16>
    %cst_38 = arith.constant dense<0.000000e+00> : vector<8x8xf32>
    %122 = tpu.matmul %121, %107, %cst_38 {dimension_numbers = #tpu.dot_dimension_numbers<[1], [0], [0], [1], [0, 0, 1, 1], [], []>} : vector<8x8xbf16>, vector<8x8xbf16>, vector<8x8xf32> -> vector<8x8xf32>
    %123 = arith.truncf %122 : vector<8x8xf32> to vector<8x8xbf16>
    %124 = vector.extract_strided_slice %10 {offsets = [0, 0], sizes = [8, 32], strides = [1, 1]} : vector<32x32xbf16> to vector<8x32xbf16>
    %cst_39 = arith.constant dense<0.000000e+00> : vector<8x32xf32>
    %125 = tpu.matmul %123, %124, %cst_39 {dimension_numbers = #tpu.dot_dimension_numbers<[1], [0], [0], [1], [0, 0, 1, 1], [], []>} : vector<8x8xbf16>, vector<8x32xbf16>, vector<8x32xf32> -> vector<8x32xf32>
    %126 = arith.addf %104, %125 : vector<8x32xf32>
    %127 = vector.extract_strided_slice %8 {offsets = [8, 8], sizes = [8, 8], strides = [1, 1]} : vector<16x96xbf16> to vector<8x8xbf16>
    %128 = vector.extract_strided_slice %8 {offsets = [8, 40], sizes = [8, 8], strides = [1, 1]} : vector<16x96xbf16> to vector<8x8xbf16>
    %129 = vector.extract_strided_slice %8 {offsets = [8, 72], sizes = [8, 8], strides = [1, 1]} : vector<16x96xbf16> to vector<8x8xbf16>
    %cst_40 = arith.constant dense<0.000000e+00> : vector<8x8xf32>
    %130 = tpu.matmul %127, %128, %cst_40 {dimension_numbers = #tpu.dot_dimension_numbers<[1], [1], [0], [0], [0, 0, 1, 0], [], []>} : vector<8x8xbf16>, vector<8x8xbf16>, vector<8x8xf32> -> vector<8x8xf32>
    %131 = vector.broadcast %103 : vector<1x8xf32> to vector<8x8xf32>
    %132 = arith.addf %130, %131 : vector<8x8xf32>
    %cst_41 = arith.constant dense<0xFF800000> : vector<8xf32>
    %133 = vector.multi_reduction <maximumf>, %132, %cst_41 [1] : vector<8x8xf32> to vector<8xf32>
    %134 = vector.shape_cast %133 : vector<8xf32> to vector<8x1xf32>
    %135 = vector.broadcast %134 : vector<8x1xf32> to vector<8x8xf32>
    %136 = arith.subf %132, %135 : vector<8x8xf32>
    %137 = math.exp %136 : vector<8x8xf32>
    %cst_42 = arith.constant dense<0.000000e+00> : vector<8xf32>
    %138 = vector.multi_reduction <add>, %137, %cst_42 [1] : vector<8x8xf32> to vector<8xf32>
    %139 = vector.shape_cast %138 : vector<8xf32> to vector<8x1xf32>
    %140 = tpu.reciprocal %139 {approx = true} : vector<8x1xf32> -> vector<8x1xf32>
    %141 = vector.broadcast %140 : vector<8x1xf32> to vector<8x8xf32>
    %142 = arith.mulf %137, %141 : vector<8x8xf32>
    %143 = arith.truncf %142 : vector<8x8xf32> to vector<8x8xbf16>
    %cst_43 = arith.constant dense<0.000000e+00> : vector<8x8xf32>
    %144 = tpu.matmul %143, %129, %cst_43 {dimension_numbers = #tpu.dot_dimension_numbers<[1], [0], [0], [1], [0, 0, 1, 1], [], []>} : vector<8x8xbf16>, vector<8x8xbf16>, vector<8x8xf32> -> vector<8x8xf32>
    %145 = arith.truncf %144 : vector<8x8xf32> to vector<8x8xbf16>
    %146 = vector.extract_strided_slice %10 {offsets = [8, 0], sizes = [8, 32], strides = [1, 1]} : vector<32x32xbf16> to vector<8x32xbf16>
    %cst_44 = arith.constant dense<0.000000e+00> : vector<8x32xf32>
    %147 = tpu.matmul %145, %146, %cst_44 {dimension_numbers = #tpu.dot_dimension_numbers<[1], [0], [0], [1], [0, 0, 1, 1], [], []>} : vector<8x8xbf16>, vector<8x32xbf16>, vector<8x32xf32> -> vector<8x32xf32>
    %148 = arith.addf %126, %147 : vector<8x32xf32>
    %149 = vector.extract_strided_slice %8 {offsets = [8, 16], sizes = [8, 8], strides = [1, 1]} : vector<16x96xbf16> to vector<8x8xbf16>
    %150 = vector.extract_strided_slice %8 {offsets = [8, 48], sizes = [8, 8], strides = [1, 1]} : vector<16x96xbf16> to vector<8x8xbf16>
    %151 = vector.extract_strided_slice %8 {offsets = [8, 80], sizes = [8, 8], strides = [1, 1]} : vector<16x96xbf16> to vector<8x8xbf16>
    %cst_45 = arith.constant dense<0.000000e+00> : vector<8x8xf32>
    %152 = tpu.matmul %149, %150, %cst_45 {dimension_numbers = #tpu.dot_dimension_numbers<[1], [1], [0], [0], [0, 0, 1, 0], [], []>} : vector<8x8xbf16>, vector<8x8xbf16>, vector<8x8xf32> -> vector<8x8xf32>
    %153 = vector.broadcast %103 : vector<1x8xf32> to vector<8x8xf32>
    %154 = arith.addf %152, %153 : vector<8x8xf32>
    %cst_46 = arith.constant dense<0xFF800000> : vector<8xf32>
    %155 = vector.multi_reduction <maximumf>, %154, %cst_46 [1] : vector<8x8xf32> to vector<8xf32>
    %156 = vector.shape_cast %155 : vector<8xf32> to vector<8x1xf32>
    %157 = vector.broadcast %156 : vector<8x1xf32> to vector<8x8xf32>
    %158 = arith.subf %154, %157 : vector<8x8xf32>
    %159 = math.exp %158 : vector<8x8xf32>
    %cst_47 = arith.constant dense<0.000000e+00> : vector<8xf32>
    %160 = vector.multi_reduction <add>, %159, %cst_47 [1] : vector<8x8xf32> to vector<8xf32>
    %161 = vector.shape_cast %160 : vector<8xf32> to vector<8x1xf32>
    %162 = tpu.reciprocal %161 {approx = true} : vector<8x1xf32> -> vector<8x1xf32>
    %163 = vector.broadcast %162 : vector<8x1xf32> to vector<8x8xf32>
    %164 = arith.mulf %159, %163 : vector<8x8xf32>
    %165 = arith.truncf %164 : vector<8x8xf32> to vector<8x8xbf16>
    %cst_48 = arith.constant dense<0.000000e+00> : vector<8x8xf32>
    %166 = tpu.matmul %165, %151, %cst_48 {dimension_numbers = #tpu.dot_dimension_numbers<[1], [0], [0], [1], [0, 0, 1, 1], [], []>} : vector<8x8xbf16>, vector<8x8xbf16>, vector<8x8xf32> -> vector<8x8xf32>
    %167 = arith.truncf %166 : vector<8x8xf32> to vector<8x8xbf16>
    %168 = vector.extract_strided_slice %10 {offsets = [16, 0], sizes = [8, 32], strides = [1, 1]} : vector<32x32xbf16> to vector<8x32xbf16>
    %cst_49 = arith.constant dense<0.000000e+00> : vector<8x32xf32>
    %169 = tpu.matmul %167, %168, %cst_49 {dimension_numbers = #tpu.dot_dimension_numbers<[1], [0], [0], [1], [0, 0, 1, 1], [], []>} : vector<8x8xbf16>, vector<8x32xbf16>, vector<8x32xf32> -> vector<8x32xf32>
    %170 = arith.addf %148, %169 : vector<8x32xf32>
    %171 = vector.extract_strided_slice %8 {offsets = [8, 24], sizes = [8, 8], strides = [1, 1]} : vector<16x96xbf16> to vector<8x8xbf16>
    %172 = vector.extract_strided_slice %8 {offsets = [8, 56], sizes = [8, 8], strides = [1, 1]} : vector<16x96xbf16> to vector<8x8xbf16>
    %173 = vector.extract_strided_slice %8 {offsets = [8, 88], sizes = [8, 8], strides = [1, 1]} : vector<16x96xbf16> to vector<8x8xbf16>
    %cst_50 = arith.constant dense<0.000000e+00> : vector<8x8xf32>
    %174 = tpu.matmul %171, %172, %cst_50 {dimension_numbers = #tpu.dot_dimension_numbers<[1], [1], [0], [0], [0, 0, 1, 0], [], []>} : vector<8x8xbf16>, vector<8x8xbf16>, vector<8x8xf32> -> vector<8x8xf32>
    %175 = vector.broadcast %103 : vector<1x8xf32> to vector<8x8xf32>
    %176 = arith.addf %174, %175 : vector<8x8xf32>
    %cst_51 = arith.constant dense<0xFF800000> : vector<8xf32>
    %177 = vector.multi_reduction <maximumf>, %176, %cst_51 [1] : vector<8x8xf32> to vector<8xf32>
    %178 = vector.shape_cast %177 : vector<8xf32> to vector<8x1xf32>
    %179 = vector.broadcast %178 : vector<8x1xf32> to vector<8x8xf32>
    %180 = arith.subf %176, %179 : vector<8x8xf32>
    %181 = math.exp %180 : vector<8x8xf32>
    %cst_52 = arith.constant dense<0.000000e+00> : vector<8xf32>
    %182 = vector.multi_reduction <add>, %181, %cst_52 [1] : vector<8x8xf32> to vector<8xf32>
    %183 = vector.shape_cast %182 : vector<8xf32> to vector<8x1xf32>
    %184 = tpu.reciprocal %183 {approx = true} : vector<8x1xf32> -> vector<8x1xf32>
    %185 = vector.broadcast %184 : vector<8x1xf32> to vector<8x8xf32>
    %186 = arith.mulf %181, %185 : vector<8x8xf32>
    %187 = arith.truncf %186 : vector<8x8xf32> to vector<8x8xbf16>
    %cst_53 = arith.constant dense<0.000000e+00> : vector<8x8xf32>
    %188 = tpu.matmul %187, %173, %cst_53 {dimension_numbers = #tpu.dot_dimension_numbers<[1], [0], [0], [1], [0, 0, 1, 1], [], []>} : vector<8x8xbf16>, vector<8x8xbf16>, vector<8x8xf32> -> vector<8x8xf32>
    %189 = arith.truncf %188 : vector<8x8xf32> to vector<8x8xbf16>
    %190 = vector.extract_strided_slice %10 {offsets = [24, 0], sizes = [8, 32], strides = [1, 1]} : vector<32x32xbf16> to vector<8x32xbf16>
    %cst_54 = arith.constant dense<0.000000e+00> : vector<8x32xf32>
    %191 = tpu.matmul %189, %190, %cst_54 {dimension_numbers = #tpu.dot_dimension_numbers<[1], [0], [0], [1], [0, 0, 1, 1], [], []>} : vector<8x8xbf16>, vector<8x32xbf16>, vector<8x32xf32> -> vector<8x32xf32>
    %192 = arith.addf %170, %191 : vector<8x32xf32>
    %193 = tpu.concatenate %101, %192 in 0 : vector<8x32xf32>, vector<8x32xf32> -> vector<16x32xf32>
    %194 = arith.addf %193, %3 : vector<16x32xf32>
    %cst_55 = arith.constant dense<0.000000e+00> : vector<16xf32>
    %195 = vector.multi_reduction <add>, %194, %cst_55 [1] : vector<16x32xf32> to vector<16xf32>
    %196 = vector.shape_cast %195 : vector<16xf32> to vector<16x1xf32>
    %cst_56 = arith.constant 3.200000e+01 : f32
    %197 = vector.broadcast %cst_56 : f32 to vector<16x1xf32>
    %198 = arith.divf %196, %197 : vector<16x1xf32>
    %199 = vector.broadcast %198 : vector<16x1xf32> to vector<16x32xf32>
    %200 = arith.subf %194, %199 : vector<16x32xf32>
    %201 = arith.mulf %200, %200 : vector<16x32xf32>
    %cst_57 = arith.constant dense<0.000000e+00> : vector<16xf32>
    %202 = vector.multi_reduction <add>, %201, %cst_57 [1] : vector<16x32xf32> to vector<16xf32>
    %203 = vector.shape_cast %202 : vector<16xf32> to vector<16x1xf32>
    %cst_58 = arith.constant 3.200000e+01 : f32
    %204 = vector.broadcast %cst_58 : f32 to vector<16x1xf32>
    %205 = arith.divf %203, %204 : vector<16x1xf32>
    %206 = vector.broadcast %198 : vector<16x1xf32> to vector<16x32xf32>
    %207 = arith.subf %194, %206 : vector<16x32xf32>
    %cst_59 = arith.constant 9.99999974E-6 : f32
    %208 = vector.broadcast %cst_59 : f32 to vector<16x1xf32>
    %209 = arith.addf %205, %208 : vector<16x1xf32>
    %210 = math.rsqrt %209 : vector<16x1xf32>
    %211 = vector.broadcast %210 : vector<16x1xf32> to vector<16x32xf32>
    %212 = arith.mulf %207, %211 : vector<16x32xf32>
    %c0_60 = arith.constant 0 : index
    %c0_61 = arith.constant 0 : index
    %c0_62 = arith.constant 0 : index
    %213 = vector.load %arg6[%c0_60, %c0_61, %c0_62] : memref<1x1x32xf32, #tpu.memory_space<vmem>>, vector<1x1x32xf32>
    %214 = vector.shape_cast %213 : vector<1x1x32xf32> to vector<1x32xf32>
    %215 = vector.broadcast %214 : vector<1x32xf32> to vector<16x32xf32>
    %216 = arith.mulf %212, %215 : vector<16x32xf32>
    %c0_63 = arith.constant 0 : index
    %c0_64 = arith.constant 0 : index
    %c0_65 = arith.constant 0 : index
    %217 = vector.load %arg7[%c0_63, %c0_64, %c0_65] : memref<1x1x32xf32, #tpu.memory_space<vmem>>, vector<1x1x32xf32>
    %218 = vector.shape_cast %217 : vector<1x1x32xf32> to vector<1x32xf32>
    %219 = vector.broadcast %218 : vector<1x32xf32> to vector<16x32xf32>
    %220 = arith.addf %216, %219 : vector<16x32xf32>
    %221 = arith.truncf %220 : vector<16x32xf32> to vector<16x32xbf16>
    %c0_66 = arith.constant 0 : index
    %c0_67 = arith.constant 0 : index
    %c0_68 = arith.constant 0 : index
    %222 = vector.load %arg10[%c0_66, %c0_67, %c0_68] : memref<1x32x128xbf16, #tpu.memory_space<vmem>>, vector<1x32x128xbf16>
    %223 = vector.shape_cast %222 : vector<1x32x128xbf16> to vector<32x128xbf16>
    %cst_69 = arith.constant dense<0.000000e+00> : vector<16x128xf32>
    %224 = tpu.matmul %221, %223, %cst_69 {dimension_numbers = #tpu.dot_dimension_numbers<[1], [0], [0], [1], [0, 0, 1, 1], [], []>} : vector<16x32xbf16>, vector<32x128xbf16>, vector<16x128xf32> -> vector<16x128xf32>
    %c0_70 = arith.constant 0 : index
    %c0_71 = arith.constant 0 : index
    %c0_72 = arith.constant 0 : index
    %225 = vector.load %arg11[%c0_70, %c0_71, %c0_72] : memref<1x1x128xf32, #tpu.memory_space<vmem>>, vector<1x1x128xf32>
    %226 = vector.shape_cast %225 : vector<1x1x128xf32> to vector<1x128xf32>
    %227 = vector.broadcast %226 : vector<1x128xf32> to vector<16x128xf32>
    %228 = arith.addf %224, %227 : vector<16x128xf32>
    %cst_73 = arith.constant 0.000000e+00 : f32
    %229 = vector.broadcast %cst_73 : f32 to vector<16x128xf32>
    %230 = arith.maximumf %228, %229 : vector<16x128xf32>
    %231 = arith.truncf %230 : vector<16x128xf32> to vector<16x128xbf16>
    %c0_74 = arith.constant 0 : index
    %c0_75 = arith.constant 0 : index
    %c0_76 = arith.constant 0 : index
    %232 = vector.load %arg12[%c0_74, %c0_75, %c0_76] : memref<1x128x32xbf16, #tpu.memory_space<vmem>>, vector<1x128x32xbf16>
    %233 = vector.shape_cast %232 : vector<1x128x32xbf16> to vector<128x32xbf16>
    %cst_77 = arith.constant dense<0.000000e+00> : vector<16x32xf32>
    %234 = tpu.matmul %231, %233, %cst_77 {dimension_numbers = #tpu.dot_dimension_numbers<[1], [0], [0], [1], [0, 0, 1, 1], [], []>} : vector<16x128xbf16>, vector<128x32xbf16>, vector<16x32xf32> -> vector<16x32xf32>
    %c0_78 = arith.constant 0 : index
    %c0_79 = arith.constant 0 : index
    %c0_80 = arith.constant 0 : index
    %235 = vector.load %arg13[%c0_78, %c0_79, %c0_80] : memref<1x1x32xf32, #tpu.memory_space<vmem>>, vector<1x1x32xf32>
    %236 = vector.shape_cast %235 : vector<1x1x32xf32> to vector<1x32xf32>
    %237 = vector.broadcast %236 : vector<1x32xf32> to vector<16x32xf32>
    %238 = arith.addf %234, %237 : vector<16x32xf32>
    %239 = arith.addf %238, %220 : vector<16x32xf32>
    %cst_81 = arith.constant dense<0.000000e+00> : vector<16xf32>
    %240 = vector.multi_reduction <add>, %239, %cst_81 [1] : vector<16x32xf32> to vector<16xf32>
    %241 = vector.shape_cast %240 : vector<16xf32> to vector<16x1xf32>
    %cst_82 = arith.constant 3.200000e+01 : f32
    %242 = vector.broadcast %cst_82 : f32 to vector<16x1xf32>
    %243 = arith.divf %241, %242 : vector<16x1xf32>
    %244 = vector.broadcast %243 : vector<16x1xf32> to vector<16x32xf32>
    %245 = arith.subf %239, %244 : vector<16x32xf32>
    %246 = arith.mulf %245, %245 : vector<16x32xf32>
    %cst_83 = arith.constant dense<0.000000e+00> : vector<16xf32>
    %247 = vector.multi_reduction <add>, %246, %cst_83 [1] : vector<16x32xf32> to vector<16xf32>
    %248 = vector.shape_cast %247 : vector<16xf32> to vector<16x1xf32>
    %cst_84 = arith.constant 3.200000e+01 : f32
    %249 = vector.broadcast %cst_84 : f32 to vector<16x1xf32>
    %250 = arith.divf %248, %249 : vector<16x1xf32>
    %251 = vector.broadcast %243 : vector<16x1xf32> to vector<16x32xf32>
    %252 = arith.subf %239, %251 : vector<16x32xf32>
    %cst_85 = arith.constant 9.99999974E-6 : f32
    %253 = vector.broadcast %cst_85 : f32 to vector<16x1xf32>
    %254 = arith.addf %250, %253 : vector<16x1xf32>
    %255 = math.rsqrt %254 : vector<16x1xf32>
    %256 = vector.broadcast %255 : vector<16x1xf32> to vector<16x32xf32>
    %257 = arith.mulf %252, %256 : vector<16x32xf32>
    %c0_86 = arith.constant 0 : index
    %c0_87 = arith.constant 0 : index
    %c0_88 = arith.constant 0 : index
    %258 = vector.load %arg8[%c0_86, %c0_87, %c0_88] : memref<1x1x32xf32, #tpu.memory_space<vmem>>, vector<1x1x32xf32>
    %259 = vector.shape_cast %258 : vector<1x1x32xf32> to vector<1x32xf32>
    %260 = vector.broadcast %259 : vector<1x32xf32> to vector<16x32xf32>
    %261 = arith.mulf %257, %260 : vector<16x32xf32>
    %c0_89 = arith.constant 0 : index
    %c0_90 = arith.constant 0 : index
    %c0_91 = arith.constant 0 : index
    %262 = vector.load %arg9[%c0_89, %c0_90, %c0_91] : memref<1x1x32xf32, #tpu.memory_space<vmem>>, vector<1x1x32xf32>
    %263 = vector.shape_cast %262 : vector<1x1x32xf32> to vector<1x32xf32>
    %264 = vector.broadcast %263 : vector<1x32xf32> to vector<16x32xf32>
    %265 = arith.addf %261, %264 : vector<16x32xf32>
    %c0_92 = arith.constant 0 : index
    %c0_93 = arith.constant 0 : index
    %266 = vector.load %arg15[%c0_92, %c0_93] : memref<16x32xf32, #tpu.memory_space<vmem>>, vector<16x32xf32>
    tpu.vector_store %arg15[%c0_92, %c0_93], %265 {strides = array<i32>} : memref<16x32xf32, #tpu.memory_space<vmem>>, vector<16x32xf32>,
    %c1_i32 = arith.constant 1 : i32
    %267 = arith.cmpi eq, %arg1, %c1_i32 : i32
    %268 = arith.extui %267 : i1 to i32
    %c0_i32_94 = arith.constant 0 : i32
    %269 = arith.cmpi ne, %268, %c0_i32_94 : i32
    scf.if %269 {
      %c0_95 = arith.constant 0 : index
      %c0_96 = arith.constant 0 : index
      %270 = vector.load %arg14[%c0_95, %c0_96] : memref<16x32xf32, #tpu.memory_space<vmem>>, vector<16x32xf32>
      tpu.vector_store %arg14[%c0_95, %c0_96], %265 {strides = array<i32>} : memref<16x32xf32, #tpu.memory_space<vmem>>, vector<16x32xf32>,
    } else {
    }
    return
  }
  func.func @transform_0(%arg0: i32, %arg1: i32) -> (i32, i32) {
    %c0_i32 = arith.constant 0 : i32
    %c0_i32_0 = arith.constant 0 : i32
    return %arg0, %c0_i32 : i32, i32
  }
  func.func @transform_1(%arg0: i32, %arg1: i32) -> (i32, i32, i32) {
    %c0_i32 = arith.constant 0 : i32
    %c0_i32_0 = arith.constant 0 : i32
    %c0_i32_1 = arith.constant 0 : i32
    return %arg0, %c0_i32, %c0_i32_0 : i32, i32, i32
  }
  func.func @transform_2(%arg0: i32, %arg1: i32) -> (i32, i32, i32) {
    %c0_i32 = arith.constant 0 : i32
    %c0_i32_0 = arith.constant 0 : i32
    %c0_i32_1 = arith.constant 0 : i32
    return %arg1, %c0_i32, %c0_i32_0 : i32, i32, i32
  }
  func.func @transform_3(%arg0: i32, %arg1: i32) -> (i32, i32, i32) {
    %c0_i32 = arith.constant 0 : i32
    %c0_i32_0 = arith.constant 0 : i32
    %c0_i32_1 = arith.constant 0 : i32
    return %arg1, %c0_i32, %c0_i32_0 : i32, i32, i32
  }
  func.func @transform_4(%arg0: i32, %arg1: i32) -> (i32, i32, i32) {
    %c0_i32 = arith.constant 0 : i32
    %c0_i32_0 = arith.constant 0 : i32
    %c0_i32_1 = arith.constant 0 : i32
    return %arg1, %c0_i32, %c0_i32_0 : i32, i32, i32
  }
  func.func @transform_5(%arg0: i32, %arg1: i32) -> (i32, i32, i32) {
    %c0_i32 = arith.constant 0 : i32
    %c0_i32_0 = arith.constant 0 : i32
    %c0_i32_1 = arith.constant 0 : i32
    return %arg1, %c0_i32, %c0_i32_0 : i32, i32, i32
  }
  func.func @transform_6(%arg0: i32, %arg1: i32) -> (i32, i32, i32) {
    %c0_i32 = arith.constant 0 : i32
    %c0_i32_0 = arith.constant 0 : i32
    %c0_i32_1 = arith.constant 0 : i32
    return %arg1, %c0_i32, %c0_i32_0 : i32, i32, i32
  }
  func.func @transform_7(%arg0: i32, %arg1: i32) -> (i32, i32, i32) {
    %c0_i32 = arith.constant 0 : i32
    %c0_i32_0 = arith.constant 0 : i32
    %c0_i32_1 = arith.constant 0 : i32
    return %arg1, %c0_i32, %c0_i32_0 : i32, i32, i32
  }
  func.func @transform_8(%arg0: i32, %arg1: i32) -> (i32, i32, i32) {
    %c0_i32 = arith.constant 0 : i32
    %c0_i32_0 = arith.constant 0 : i32
    %c0_i32_1 = arith.constant 0 : i32
    return %arg1, %c0_i32, %c0_i32_0 : i32, i32, i32
  }
  func.func @transform_9(%arg0: i32, %arg1: i32) -> (i32, i32, i32) {
    %c0_i32 = arith.constant 0 : i32
    %c0_i32_0 = arith.constant 0 : i32
    %c0_i32_1 = arith.constant 0 : i32
    return %arg1, %c0_i32, %c0_i32_0 : i32, i32, i32
  }
  func.func @transform_10(%arg0: i32, %arg1: i32) -> (i32, i32, i32) {
    %c0_i32 = arith.constant 0 : i32
    %c0_i32_0 = arith.constant 0 : i32
    %c0_i32_1 = arith.constant 0 : i32
    return %arg1, %c0_i32, %c0_i32_0 : i32, i32, i32
  }
  func.func @transform_11(%arg0: i32, %arg1: i32) -> (i32, i32, i32) {
    %c0_i32 = arith.constant 0 : i32
    %c0_i32_0 = arith.constant 0 : i32
    %c0_i32_1 = arith.constant 0 : i32
    return %arg1, %c0_i32, %c0_i32_0 : i32, i32, i32
  }
  func.func @transform_12(%arg0: i32, %arg1: i32) -> (i32, i32) {
    %c0_i32 = arith.constant 0 : i32
    %c0_i32_0 = arith.constant 0 : i32
    return %arg0, %c0_i32 : i32, i32
  }
}

</mosaic_0001>

<bundles_post_ra>
// kernel: tpu_custom_call.1
= control target key start
LH: loop header
LB: loop body
LE: loop exit
PB: predicated region body
PF: predicated region fallthrough
CT: control target
= control target key end

     0   :  { %s2360_s0 = inlined_call_operand.vmem [shape: f32[16,32], index: 0, kind: input, shape index: {}]   ;;  %s2361_s1 = inlined_call_operand.vmem [shape: f32[2,1,8], index: 1, kind: input, shape index: {}]   ;;  %s2362_s2 = inlined_call_operand.vmem [shape: bf16[2,32,96], index: 2, kind: input, shape index: {}]   ;;  %s2363_s3 = inlined_call_operand.vmem [shape: bf16[2,32,32], index: 3, kind: input, shape index: {}]   ;;  %s2364_s4 = inlined_call_operand.vmem [shape: f32[2,1,32], index: 4, kind: input, shape index: {}]   ;;  %s2365_s5 = inlined_call_operand.vmem [shape: f32[2,1,32], index: 5, kind: input, shape index: {}]   ;;  %s2366_s6 = inlined_call_operand.vmem [shape: f32[2,1,32], index: 6, kind: input, shape index: {}]   ;;  %s2367_s7 = inlined_call_operand.vmem [shape: f32[2,1,32], index: 7, kind: input, shape index: {}]   ;;  %s2368_s8 = inlined_call_operand.vmem [shape: bf16[2,32,128], index: 8, kind: input, shape index: {}]   ;;  %s2369_s9 = inlined_call_operand.vmem [shape: f32[2,1,128], index: 9, kind: input, shape index: {}]   ;;  %s2370_s10 = inlined_call_operand.vmem [shape: bf16[2,128,32], index: 10, kind: input, shape index: {}]   ;;  %s2371_s11 = inlined_call_operand.vmem [shape: f32[2,1,32], index: 11, kind: input, shape index: {}]   ;;  %s2372_s12 = inlined_call_operand.hbm [shape: f32[16,32], index: 12, kind: output, shape index: {}]  }
   0x1   :  { %2375 = sst [smem:[#allocation9_spill]] %s2362_s2 }
   0x2   :  { %2376 = sst [smem:[#allocation10_spill]] %s2363_s3 }
   0x3   :  { %2377 = sst [smem:[#allocation11_spill]] %s2372_s12 }
   0x4   :  { %17 = vsyncpa [#allocation4], 0  ;;  %s2046_s21 = smov 0   ;;  %s2048_s22 = smov 0  }
   0x5   :  { %s2050_s23 = smov 0  }
   0x6 LB: > { %2378 = sst [smem:[#allocation6_spill]] %s1960_s22  ;;  %s32_s25 = sadd.s32 1, %s1960_s22  ;;  %s1964_s23 = sphi %s2050_s23, %s23_s23   ;;  %s1960_s22 = sphi %s2048_s22, %s2390_s22   ;;  %s1956_s21 = sphi %s2046_s21, %s2389_s21  }
   0x7   : > { %2379 = sst [smem:[#allocation7_spill]] %s1964_s23  ;;  %p33_p0 = scmp.ge.s32.totalorder %s32_s25, 2 }
   0x8   : > { %p1709_p1 = scmp.ge.s32.totalorder %s1964_s23, 1  ;;  %p474_p2 = scmp.lt.s32.totalorder %s1964_s23, 3 }
   0x9   : > { %s2392_s25 = smov (%p33_p0, %s32_s25), 0 }
   0xa   : > { %2380 = sst [smem:[#allocation8_spill]] %s2392_s25  ;;  %p475_p3 = pnand %p1709_p1, %p474_p2 }
   0xb   : > { %p564_p4 = scmp.lt.s32.totalorder (!%p475_p3), %s1956_s21, 1  ;;  %s2381_s2 = sld [smem:[#allocation9_spill]] (!%p475_p3) }
   0xc   : > { %478 = sbr.rel (%p475_p3) target bundleno = 2895 (0xb4f), region = 68  ;;  %s2382_s3 = sld [smem:[#allocation10_spill]] (!%p475_p3) }
   0xd   : > { %p1718_p5 = scmp.ne.s32.totalorder (!%p475_p3), %s1956_s21, 0 }
  0x11   : > { %s2069_s26 = scalar_select %p564_p4, %s1956_s21, 1 }
  0x13   : > { %s1799_s27 = sshll.u32 %s2069_s26, 4  ;;  %s582_s12 = scalar_lea.vmem %s2366_s6, %s2069_s26 }
  0x14   : > { %s568_s15 = scalar_lea.vmem %s2381_s2, %s1799_s27  ;;  %s2082_s18 = scalar_lea.vmem %s2382_s3, %s1799_s27 }
  0x15   : > { %s585_s29 = scalar_lea.vmem %s2367_s7, %s2069_s26  ;;  %s2099_s14 = scalar_lea.vmem %s2368_s8, %s1799_s27 }
  0x16   : > { %s593_s2 = scalar_lea.vmem %s2369_s9, %s2069_s26  ;;  %s1802_s3 = sshll.u32 %s2069_s26, 6 }
  0x17   : > { %s2109_s24 = scalar_lea.vmem %s2370_s10, %s1802_s3  ;;  %s601_s23 = scalar_lea.vmem %s2371_s11, %s2069_s26 }
  0x18   : > { %607 = sbr.rel (%p1718_p5) target bundleno = 32 (0x20), region = 72 }
  0x1d   : > { %v608_v0 = vld [vmem:[%s2360_s0] sm:$0xff]  ;;  %vm610_vm0 = vcmask 261120   ;;  %v609_v1 = vld [vmem:[%s2360_s0 + $0x8] sm:$0xff] }
  0x1e   : > { %611 = vst.msk [vmem:[#allocation2] sm:$0xff] %vm610_vm0, %v608_v0 }
  0x1f   : > { %612 = vst.msk [vmem:[#allocation2 + $0x8] sm:$0xff] %vm610_vm0, %v609_v1 }
  0x20 PF: > { %v1804_v2 = vld [vmem:[%s568_s15 + $0x8] sm:$0xff]  ;;  %v1803_v3 = vld [vmem:[%s568_s15] sm:$0xff]  ;;  %vm632_vm1 = vcmask 261120   ;;  %s1966_s3 = smov 112   ;;  %s1967_s15 = smov 120   ;;  %vm665_vm2 = vcmask 64512  }
  0x21   : > { %642 = vmatpush.bf16.msra.mxu0 %v1804_v2  ;;  %s1968_s16 = smov 96   ;;  %s1969_s17 = smov 80   ;;  %v2150_v19 = vld [vmem:[%s2361_s1] ss:$0 sm:$0xff]  ;;  %vm702_vm3 = vcmask 1043456  }
  0x22   : > { %s1970_s19 = smov 88   ;;  %s1971_s25 = smov 56   ;;  %v652_v42 = vld [vmem:[%s2082_s18] sm:$0xf] }
  0x23   : > { %s1972_s30 = smov 72   ;;  %v2166_v45 = vsel %vm702_vm3, %v652_v42, 0  ;;  %s1973_s27 = smov 64  }
  0x24   : > { %809 = vmatpush.bf16.msra.mxu1 %v2166_v45  ;;  %s1974_s28 = smov 104   ;;  %s1975_s13 = smov 48  }
  0x25   : > { %v2122_v4 = vld [vmem:[#allocation2] sm:$0xff]  ;;  %643 = vmatpush.bf16.msra.mxu0 %v1803_v3  ;;  %s2384_s22 = scalar_lea.vmem %s2365_s5, %s2069_s26  ;;  %p1794_p6 = scmp.ne.s32.totalorder %s1956_s21, 1 }
  0x26   : > { %v2124_v5 = vld [vmem:[#allocation2 + $0x8] sm:$0xff] }
  0x27   : > { %v615_v6 = vpack.c.bf16 %v2124_v5, %v2122_v4 }
  0x29   : > { %1727 = vmatmul.msk.bf16.vlgmr.msra.gmra.mxu0 %vm632_vm1, %v615_v6 }
  0xa6   : > { %v645_v7 = vpop.f32.mrf.mxu0 }
  0xa7   : > { %v650_v8 = vpack.c.bf16 %v645_v7, %v645_v7 }
  0xa9   : > { %v661_v9 = vunpack.c.l.b16 %v650_v8 }
  0xab   : > { %v2129_v10 = vpack.c.b16 %v661_v9, %v661_v9 }
  0xad   : > { %815 = vrot.lane.b32.xlu2 %v2129_v10, %s1966_s3  ;;  %720 = vrot.lane.b32.xlu1 %v2129_v10, %s1967_s15 }
  0xae   : > { %663 = vrot.lane.b32.xlu0 %v2129_v10, %s1968_s16  ;;  %v647_v43 = vpop.f32.mrf.mxu0 }
  0xaf   : > { %v2169_v47 = vpack.c.bf16 %v647_v43, %v647_v43  ;;  %v2214_v43 = vld [vmem:[%s2361_s1 + $0x1] ss:$0 sm:$0xff] }
  0xb1   : > { %v975_v49 = vunpack.c.l.b16 %v2169_v47 }
  0xb3   : > { %v2173_v51 = vpack.c.b16 %v975_v49, %v975_v49 }
  0xb5   : > { %817 = vrot.lane.b32.xlu1 %v2129_v10, %s1969_s17 }
  0xb6   : > { %722 = vrot.lane.b32.xlu0 %v2129_v10, %s1970_s19 }
 0x107   : > { %v816_v18 = vpop.permute.xlu2 %815 }
 0x11f   : > { %v721_v11 = vpop.permute.xlu1 %720 }
 0x120   : > { %v664_v12 = vpop.permute.xlu0 %663 }
 0x121   : > { %v670_v13 = vsel %vm665_vm2, %v664_v12, 0  ;;  %v653_v12 = vld [vmem:[%s2082_s18 + $0x4] sm:$0xf] }
 0x122   : > { %679 = vmatpush.bf16.xpose.msra.mxu3 %v670_v13  ;;  %v781_v13 = vsel %vm702_vm3, %v653_v12, 0 }
 0x123   : > { %790 = vmatpush.bf16.msrb.mxu0 %v781_v13 }
 0x127   : > { %v818_v14 = vpop.permute.xlu1 %817 }
 0x128   : > { %v823_v15 = vsel %vm665_vm2, %v818_v14, 0  ;;  %v723_v16 = vpop.permute.xlu0 %722 }
 0x129   : > { %1728 = vmatmul.msk.bf16.vlgmr.msra.gmra.mxu3 %vm665_vm2, %v650_v8  ;;  %v728_v17 = vsel %vm665_vm2, %v723_v16, 0 }
 0x12a   : > { %737 = vmatpush.bf16.xpose.msrb.mxu3 %v728_v17 }
 0x132   : > { %832 = vmatpush.bf16.xpose.msra.mxu3 %v823_v15  ;;  %v654_v15 = vld [vmem:[%s2082_s18 + $0x8] sm:$0xf] }
 0x133   : > { %v876_v16 = vsel %vm702_vm3, %v654_v15, 0 }
 0x134   : > { %885 = vmatpush.bf16.msra.mxu0 %v876_v16 }
 0x139   : > { %1730 = vmatmul.msk.bf16.vlgmr.msrb.gmra.mxu3 %vm665_vm2, %v721_v11 }
 0x149   : > { %1734 = vmatmul.msk.bf16.vlgmr.msra.gmra.mxu3 %vm665_vm2, %v816_v18 }
 0x1ac   : > { %v681_v20 = vpop.f32.mrf.mxu3 }
 0x1ad   : > { %v682_v21 = vadd.f32 %v2150_v19, %v681_v20 }
 0x1af   : > { %v685_v22 = vsel %vm665_vm2, %v682_v21, -inf }
 0x1b0   : > { %686 = vmax.xlane.f32.xlu2 %v685_v22 }
 0x1b4   : > { %v683_v23 = vpop.f32.mrf.mxu3 }
 0x1bc   : > { %v739_v24 = vpop.f32.mrf.mxu3 }
 0x1bd   : > { %v740_v25 = vadd.f32 %v2150_v19, %v739_v24 }
 0x1bf   : > { %v743_v26 = vsel %vm665_vm2, %v740_v25, -inf }
 0x1c0   : > { %744 = vmax.xlane.f32.xlu0 %v743_v26 }
 0x1c4   : > { %v741_v27 = vpop.f32.mrf.mxu3 }
 0x1cc   : > { %v834_v28 = vpop.f32.mrf.mxu3 }
 0x1cd   : > { %v835_v29 = vadd.f32 %v2150_v19, %v834_v28 }
 0x1cf   : > { %v838_v30 = vsel %vm665_vm2, %v835_v29, -inf }
 0x1d0   : > { %839 = vmax.xlane.f32.xlu1 %v838_v30 }
 0x1d4   : > { %v836_v31 = vpop.f32.mrf.mxu3 }
 0x1e9   : > { %755 = vrot.lane.b32.xlu1 %v2129_v10, %s1971_s25 }
 0x1f1   : > { %894 = vrot.lane.b32.xlu1 %v2129_v10, %s1972_s30 }
 0x223   : > { %v687_v32 = vpop.xlane.xlu2 %686 }
 0x224   : > { %v688_v33 = vsub.f32 %v682_v21, %v687_v32 }
 0x226   : > { %v689_v34 = vmul.f32 1.442695, %v688_v33 }
 0x228   : > { %1868 = vpow2.f32 %v689_v34 }
 0x22e   : > { %v1869_v35 = vpop.eup %1868 }
 0x22f   : > { %v691_v36 = vsel %vm665_vm2, %v1869_v35, 0.0 }
 0x230   : > { %692 = vadd.xlane.f32.xlu2 %v691_v36 }
 0x233   : > { %v745_v37 = vpop.xlane.xlu0 %744 }
 0x234   : > { %v746_v38 = vsub.f32 %v740_v25, %v745_v37 }
 0x236   : > { %v747_v39 = vmul.f32 1.442695, %v746_v38 }
 0x238   : > { %1870 = vpow2.f32 %v747_v39 }
 0x23e   : > { %v1871_v40 = vpop.eup %1870 }
 0x23f   : > { %v749_v41 = vsel %vm665_vm2, %v1871_v40, 0.0 }
 0x240   : > { %750 = vadd.xlane.f32.xlu0 %v749_v41 }
 0x243   : > { %v840_v44 = vpop.xlane.xlu1 %839 }
 0x244   : > { %v841_v46 = vsub.f32 %v835_v29, %v840_v44 }
 0x246   : > { %v842_v48 = vmul.f32 1.442695, %v841_v46 }
 0x248   : > { %1872 = vpow2.f32 %v842_v48  ;;  %697 = vrot.lane.b32.xlu2 %v2129_v10, %s1973_s27 }
 0x24e   : > { %v1873_v50 = vpop.eup %1872 }
 0x24f   : > { %v844_v52 = vsel %vm665_vm2, %v1873_v50, 0.0 }
 0x250   : > { %845 = vadd.xlane.f32.xlu0 %v844_v52  ;;  %977 = vrot.lane.b32.xlu2 %v2173_v51, %s1968_s16 }
 0x258   : > { %892 = vrot.lane.b32.xlu2 %v2129_v10, %s1974_s28 }
 0x25b   : > { %v756_v53 = vpop.permute.xlu1 %755 }
 0x25c   : > { %v761_v61 = vsel %vm702_vm3, %v756_v53, 0 }
 0x260   : > { %1010 = vrot.lane.b32.xlu2 %v2173_v51, %s1973_s27 }
 0x263   : > { %v895_v54 = vpop.permute.xlu1 %894 }
 0x264   : > { %850 = vrot.lane.b32.xlu0 %v2129_v10, %s1975_s13  ;;  %v900_v55 = vsel %vm665_vm2, %v895_v54, 0 }
 0x265   : > { %909 = vmatpush.bf16.xpose.msrb.mxu1 %v900_v55 }
 0x2a3   : > { %v693_v56 = vpop.xlane.xlu2 %692 }
 0x2a4   : > { %1874 = vrcp.f32 %v693_v56 }
 0x2aa   : > { %v1875_v57 = vpop.eup %1874 }
 0x2ab   : > { %v698_v58 = vpop.permute.xlu2 %697  ;;  %v695_v59 = vmul.f32 %v1875_v57, %v1869_v35 }
 0x2ac   : > { %v704_v60 = vsel %vm702_vm3, %v698_v58, 0 }
 0x2ad   : > { %713 = vmatpush.bf16.msra.mxu2 %v704_v60  ;;  %v696_v62 = vpack.c.bf16 %v695_v59, %v695_v59 }
 0x2b0   : > { %1729 = vmatmul.msk.bf16.vlgmr.msra.gmra.mxu2 %vm665_vm2, %v696_v62 }
 0x2b1   : > { %770 = vmatpush.bf16.msrb.mxu2 %v761_v61 }
 0x2b3   : > { %v751_v63 = vpop.xlane.xlu0 %750  ;;  %v978_v14 = vpop.permute.xlu2 %977 }
 0x2b4   : > { %1876 = vrcp.f32 %v751_v63  ;;  %v983_v26 = vsel %vm665_vm2, %v978_v14, 0  ;;  %v655_v14 = vld [vmem:[%s2082_s18 + $0xc] sm:$0xf] }
 0x2b5   : > { %v2240_v15 = vsel %vm702_vm3, %v655_v14, 0 }
 0x2ba   : > { %v1877_v0 = vpop.eup %1876 }
 0x2bb   : > { %v753_v1 = vmul.f32 %v1877_v0, %v1871_v40  ;;  %v893_v17 = vpop.permute.xlu2 %892 }
 0x2bd   : > { %v754_v2 = vpack.c.bf16 %v753_v1, %v753_v1 }
 0x2c0   : > { %1731 = vmatmul.msk.bf16.vlgmr.msrb.gmra.mxu2 %vm665_vm2, %v754_v2 }
 0x2c3   : > { %v846_v3 = vpop.xlane.xlu0 %845  ;;  %v1011_v18 = vpop.permute.xlu2 %1010 }
 0x2c4   : > { %1878 = vrcp.f32 %v846_v3  ;;  %v1016_v22 = vsel %vm702_vm3, %v1011_v18, 0 }
 0x2ca   : > { %v1879_v6 = vpop.eup %1878 }
 0x2cb   : > { %v848_v7 = vmul.f32 %v1879_v6, %v1873_v50 }
 0x2cd   : > { %v849_v11 = vpack.c.bf16 %v848_v7, %v848_v7 }
 0x2d6   : > { %v851_v8 = vpop.permute.xlu0 %850 }
 0x2d7   : > { %v856_v9 = vsel %vm702_vm3, %v851_v8, 0 }
 0x2d8   : > { %865 = vmatpush.bf16.msra.mxu2 %v856_v9 }
 0x2db   : > { %1735 = vmatmul.msk.bf16.vlgmr.msra.gmra.mxu2 %vm665_vm2, %v849_v11 }
 0x2dc   : > { %962 = vmatpush.bf16.msrb.mxu2 %v2240_v15 }
 0x333   : > { %v715_v20 = vpop.f32.mrf.mxu2 }
 0x334   : > { %v719_v21 = vpack.c.bf16 %v715_v20, %v715_v20 }
 0x336   : > { %1733 = vmatmul.msk.bf16.vlgmr.msra.gmra.mxu1 %vm665_vm2, %v719_v21 }
 0x337   : > { %1025 = vmatpush.bf16.msra.mxu1 %v1016_v22 }
 0x33b   : > { %v717_v23 = vpop.f32.mrf.mxu2 }
 0x343   : > { %v772_v24 = vpop.f32.mrf.mxu2 }
 0x344   : > { %v776_v25 = vpack.c.bf16 %v772_v24, %v772_v24 }
 0x346   : > { %1732 = vmatmul.msk.bf16.vlgmr.msrb.gmra.mxu0 %vm665_vm2, %v776_v25  ;;  %1737 = vmatmul.msk.bf16.vlgmr.msrb.gmra.mxu1 %vm665_vm2, %v893_v17 }
 0x347   : > { %992 = vmatpush.bf16.xpose.msrb.mxu0 %v983_v26  ;;  %1115 = vmatpush.bf16.msrb.mxu1 %v2166_v45 }
 0x34b   : > { %v774_v27 = vpop.f32.mrf.mxu2 }
 0x35e   : > { %v867_v28 = vpop.f32.mrf.mxu2 }
 0x35f   : > { %v871_v29 = vpack.c.bf16 %v867_v28, %v867_v28 }
 0x361   : > { %1736 = vmatmul.msk.bf16.vlgmr.msra.gmra.mxu0 %vm665_vm2, %v871_v29 }
 0x362   : > { %1099 = vmatpush.bf16.msra.mxu0 %v781_v13 }
 0x366   : > { %v869_v30 = vpop.f32.mrf.mxu2 }
 0x371   : > { %1741 = vmatmul.msk.bf16.vlgmr.msrb.gmra.mxu0 %vm665_vm2, %v2169_v47 }
 0x372   : > { %1188 = vmatpush.bf16.msrb.mxu0 %v876_v16 }
 0x3b3   : > { %v811_v31 = vpop.f32.mrf.mxu1 }
 0x3bb   : > { %v813_v32 = vpop.f32.mrf.mxu1 }
 0x3c3   : > { %v792_v33 = vpop.f32.mrf.mxu0  ;;  %v911_v34 = vpop.f32.mrf.mxu1 }
 0x3c4   : > { %v812_v35 = vadd.f32 %v811_v31, %v792_v33  ;;  %v912_v36 = vadd.f32 %v2150_v19, %v911_v34 }
 0x3c6   : > { %v915_v37 = vsel %vm665_vm2, %v912_v36, -inf }
 0x3c7   : > { %916 = vmax.xlane.f32.xlu2 %v915_v37 }
 0x3cb   : > { %v794_v38 = vpop.f32.mrf.mxu0  ;;  %v913_v39 = vpop.f32.mrf.mxu1 }
 0x3de   : > { %v887_v40 = vpop.f32.mrf.mxu0 }
 0x3df   : > { %v2205_v41 = vadd.f32 %v887_v40, %v812_v35  ;;  %1032 = vrot.lane.b32.xlu2 %v2173_v51, %s1967_s15  ;;  %s1976_s15 = smov 40  }
 0x3e6   : > { %v889_v42 = vpop.f32.mrf.mxu0 }
 0x3e7   : > { %1195 = vrot.lane.b32.xlu2 %v2173_v51, %s1974_s28 }
 0x3ee   : > { %v994_v19 = vpop.f32.mrf.mxu0 }
 0x3ef   : > { %v995_v44 = vadd.f32 %v2214_v43, %v994_v19 }
 0x3f1   : > { %v998_v45 = vsel %vm665_vm2, %v995_v44, -inf }
 0x3f2   : > { %999 = vmax.xlane.f32.xlu1 %v998_v45 }
 0x3f6   : > { %v996_v46 = vpop.f32.mrf.mxu0 }
 0x43a   : > { %v917_v47 = vpop.xlane.xlu2 %916 }
 0x43b   : > { %v918_v48 = vsub.f32 %v912_v36, %v917_v47 }
 0x43d   : > { %v919_v49 = vmul.f32 1.442695, %v918_v48 }
 0x43f   : > { %1880 = vpow2.f32 %v919_v49 }
 0x442   : > { %v1033_v12 = vpop.permute.xlu2 %1032 }
 0x445   : > { %v1881_v50 = vpop.eup %1880 }
 0x446   : > { %v921_v52 = vsel %vm665_vm2, %v1881_v50, 0.0 }
 0x447   : > { %922 = vadd.xlane.f32.xlu1 %v921_v52 }
 0x44a   : > { %v1196_v20 = vpop.permute.xlu2 %1195 }
 0x460   : > { %1034 = vrot.lane.b32.xlu1 %v2173_v51, %s1970_s19 }
 0x465   : > { %v1000_v53 = vpop.xlane.xlu1 %999 }
 0x466   : > { %v1001_v54 = vsub.f32 %v995_v44, %v1000_v53 }
 0x468   : > { %v1002_v55 = vmul.f32 1.442695, %v1001_v54  ;;  %1121 = vrot.lane.b32.xlu1 %v2173_v51, %s1966_s3  ;;  %s2383_s3 = scalar_lea.vmem %s2364_s4, %s2069_s26 }
 0x46a   : > { %1882 = vpow2.f32 %v1002_v55 }
 0x470   : > { %v1883_v56 = vpop.eup %1882 }
 0x471   : > { %v1004_v57 = vsel %vm665_vm2, %v1883_v56, 0.0 }
 0x472   : > { %1005 = vadd.xlane.f32.xlu0 %v1004_v57 }
 0x486   : > { %927 = vrot.lane.b32.xlu0 %v2129_v10, %s1976_s15 }
 0x48e   : > { %1123 = vrot.lane.b32.xlu0 %v2173_v51, %s1969_s17 }
 0x496   : > { %1197 = vrot.lane.b32.xlu0 %v2173_v51, %s1972_s30 }
 0x4ba   : > { %v923_v59 = vpop.xlane.xlu1 %922 }
 0x4d2   : > { %v1035_v1 = vpop.permute.xlu1 %1034 }
 0x4d3   : > { %v1040_v3 = vsel %vm665_vm2, %v1035_v1, 0 }
 0x4da   : > { %v1122_v13 = vpop.permute.xlu1 %1121 }
 0x4e5   : > { %v1006_v58 = vpop.xlane.xlu0 %1005 }
 0x4e6   : > { %1884 = vrcp.f32 %v1006_v58 }
 0x4e7   : > { %1886 = vrcp.f32 %v923_v59 }
 0x4ec   : > { %v1885_v60 = vpop.eup %1884 }
 0x4ed   : > { %v1008_v61 = vmul.f32 %v1885_v60, %v1883_v56  ;;  %v1887_v63 = vpop.eup %1886 }
 0x4ee   : > { %v925_v0 = vmul.f32 %v1887_v63, %v1881_v50 }
 0x4ef   : > { %v1009_v62 = vpack.c.bf16 %v1008_v61, %v1008_v61 }
 0x4f0   : > { %v926_v6 = vpack.c.bf16 %v925_v0, %v925_v0  ;;  %v1977_v0 = vmov 32.0  }
 0x4f1   : > { %1742 = vmatmul.msk.bf16.vlgmr.msra.gmra.mxu1 %vm665_vm2, %v1009_v62 }
 0x4f8   : > { %v928_v2 = vpop.permute.xlu0 %927 }
 0x4f9   : > { %v933_v10 = vsel %vm702_vm3, %v928_v2, 0 }
 0x4fa   : > { %942 = vmatpush.bf16.msrb.mxu3 %v933_v10 }
 0x4fd   : > { %1738 = vmatmul.msk.bf16.vlgmr.msrb.gmra.mxu3 %vm665_vm2, %v926_v6 }
 0x4fe   : > { %1049 = vmatpush.bf16.xpose.msra.mxu3 %v1040_v3 }
 0x500   : > { %v1124_v7 = vpop.permute.xlu0 %1123 }
 0x501   : > { %v1129_v8 = vsel %vm665_vm2, %v1124_v7, 0 }
 0x506   : > { %1138 = vmatpush.bf16.xpose.msrb.mxu3 %v1129_v8 }
 0x508   : > { %v1198_v9 = vpop.permute.xlu0 %1197 }
 0x509   : > { %v1203_v11 = vsel %vm665_vm2, %v1198_v9, 0 }
 0x50a   : > { %1212 = vmatpush.bf16.xpose.msra.mxu1 %v1203_v11 }
 0x50d   : > { %1743 = vmatmul.msk.bf16.vlgmr.msra.gmra.mxu3 %vm665_vm2, %v1033_v12 }
 0x51d   : > { %1747 = vmatmul.msk.bf16.vlgmr.msrb.gmra.mxu3 %vm665_vm2, %v1122_v13 }
 0x56e   : > { %v1027_v16 = vpop.f32.mrf.mxu1 }
 0x56f   : > { %v1031_v17 = vpack.c.bf16 %v1027_v16, %v1027_v16 }
 0x571   : > { %1746 = vmatmul.msk.bf16.vlgmr.msrb.gmra.mxu1 %vm665_vm2, %v1031_v17 }
 0x576   : > { %v1029_v18 = vpop.f32.mrf.mxu1 }
 0x580   : > { %v944_v21 = vpop.f32.mrf.mxu3 }
 0x581   : > { %v948_v22 = vpack.c.bf16 %v944_v21, %v944_v21  ;;  %1750 = vmatmul.msk.bf16.vlgmr.msra.gmra.mxu1 %vm665_vm2, %v1196_v20 }
 0x583   : > { %1739 = vmatmul.msk.bf16.vlgmr.msrb.gmra.mxu2 %vm665_vm2, %v948_v22 }
 0x588   : > { %v946_v23 = vpop.f32.mrf.mxu3 }
 0x590   : > { %v1051_v24 = vpop.f32.mrf.mxu3 }
 0x591   : > { %v1052_v25 = vadd.f32 %v2214_v43, %v1051_v24 }
 0x593   : > { %v1055_v26 = vsel %vm665_vm2, %v1052_v25, -inf }
 0x594   : > { %1056 = vmax.xlane.f32.xlu0 %v1055_v26 }
 0x598   : > { %v1053_v27 = vpop.f32.mrf.mxu3 }
 0x5a0   : > { %v1140_v28 = vpop.f32.mrf.mxu3 }
 0x5a1   : > { %v1141_v29 = vadd.f32 %v2214_v43, %v1140_v28 }
 0x5a3   : > { %v1144_v30 = vsel %vm665_vm2, %v1141_v29, -inf }
 0x5a4   : > { %1145 = vmax.xlane.f32.xlu2 %v1144_v30 }
 0x5a8   : > { %v1142_v31 = vpop.f32.mrf.mxu3 }
 0x5ee   : > { %v2250_v32 = vpop.f32.mrf.mxu1 }
 0x5f6   : > { %v1119_v33 = vpop.f32.mrf.mxu1 }
 0x5fe   : > { %v1214_v34 = vpop.f32.mrf.mxu1 }
 0x5ff   : > { %v1215_v35 = vadd.f32 %v2214_v43, %v1214_v34 }
 0x601   : > { %v1218_v36 = vsel %vm665_vm2, %v1215_v35, -inf }
 0x602   : > { %1219 = vmax.xlane.f32.xlu1 %v1218_v36 }
 0x606   : > { %v964_v37 = vpop.f32.mrf.mxu2  ;;  %v1216_v38 = vpop.f32.mrf.mxu1 }
 0x607   : > { %v1057_v39 = vpop.xlane.xlu0 %1056  ;;  %v968_v50 = vadd.f32 %v964_v37, %v2205_v41 }
 0x608   : > { %v1058_v40 = vsub.f32 %v1052_v25, %v1057_v39 }
 0x609   : > { %v1269_v52 = vadd.f32 %v968_v50, %v2122_v4 }
 0x60a   : > { %v1059_v42 = vmul.f32 1.442695, %v1058_v40 }
 0x60b   : > { %v1271_v53 = vsel %vm632_vm1, %v1269_v52, 0.0 }
 0x60c   : > { %1888 = vpow2.f32 %v1059_v42 }
 0x60e   : > { %v966_v19 = vpop.f32.mrf.mxu2 }
 0x612   : > { %v1889_v44 = vpop.eup %1888 }
 0x613   : > { %v1061_v45 = vsel %vm665_vm2, %v1889_v44, 0.0 }
 0x614   : > { %1062 = vadd.xlane.f32.xlu0 %v1061_v45 }
 0x617   : > { %v1146_v46 = vpop.xlane.xlu2 %1145 }
 0x618   : > { %v1147_v47 = vsub.f32 %v1141_v29, %v1146_v46 }
 0x61a   : > { %v1148_v48 = vmul.f32 1.442695, %v1147_v47 }
 0x61b   : > { %1067 = vrot.lane.b32.xlu1 %v2173_v51, %s1971_s25 }
 0x61c   : > { %1890 = vpow2.f32 %v1148_v48 }
 0x622   : > { %v1891_v43 = vpop.eup %1890 }
 0x623   : > { %v1150_v49 = vsel %vm665_vm2, %v1891_v43, 0.0 }
 0x624   : > { %1151 = vadd.xlane.f32.xlu0 %v1150_v49 }
 0x638   : > { %1156 = vrot.lane.b32.xlu0 %v2173_v51, %s1975_s13 }
 0x645   : > { %1272 = vadd.xlane.f32.xlu1 %v1271_v53 }
 0x675   : > { %v1220_v54 = vpop.xlane.xlu1 %1219 }
 0x676   : > { %v1221_v55 = vsub.f32 %v1215_v35, %v1220_v54 }
 0x678   : > { %v1222_v56 = vmul.f32 1.442695, %v1221_v55  ;;  %v1805_v55 = vld [vmem:[%s2099_s14] sm:$0xff] }
 0x67a   : > { %1892 = vpow2.f32 %v1222_v56 }
 0x680   : > { %v1893_v57 = vpop.eup %1892 }
 0x681   : > { %v1224_v58 = vsel %vm665_vm2, %v1893_v57, 0.0 }
 0x682   : > { %1225 = vadd.xlane.f32.xlu2 %v1224_v58 }
 0x687   : > { %v1063_v59 = vpop.xlane.xlu0 %1062 }
 0x688   : > { %1894 = vrcp.f32 %v1063_v59 }
 0x689   : > { %1896 = vrcp.f32 %v1977_v0  ;;  %v1811_v0 = vld [vmem:[%s2109_s24 + $0x20] sm:$0xff] }
 0x68d   : > { %v1068_v60 = vpop.permute.xlu1 %1067 }
 0x68e   : > { %v1895_v61 = vpop.eup %1894  ;;  %v1073_v62 = vsel %vm702_vm3, %v1068_v60, 0 }
 0x68f   : > { %v1065_v41 = vmul.f32 %v1895_v61, %v1889_v44  ;;  %1082 = vmatpush.bf16.msra.mxu2 %v1073_v62  ;;  %v1897_v1 = vpop.eup %1896  ;;  %v1813_v61 = vld [vmem:[%s2109_s24 + $0x30] sm:$0xff] }
 0x690   : > { %v1278_v10 = vmul.f32 32.0, %v1897_v1  ;;  %vm1282_vm4 = vweird.f32 %v1897_v1 }
 0x691   : > { %v1066_v4 = vpack.c.bf16 %v1065_v41, %v1065_v41 }
 0x692   : > { %v1279_v7 = vsub.f32 1.0, %v1278_v10 }
 0x693   : > { %1744 = vmatmul.msk.bf16.vlgmr.msra.gmra.mxu2 %vm665_vm2, %v1066_v4  ;;  %v1812_v4 = vld [vmem:[%s2109_s24 + $0x28] sm:$0xff] }
 0x694   : > { %v1280_v11 = vmul.f32 %v1897_v1, %v1279_v7 }
 0x697   : > { %v1152_v63 = vpop.xlane.xlu0 %1151 }
 0x698   : > { %1898 = vrcp.f32 %v1152_v63 }
 0x69a   : > { %1230 = vrot.lane.b32.xlu2 %v2173_v51, %s1976_s15  ;;  %v1281_v51 = vadd.f32 %v1897_v1, %v1280_v11 }
 0x69c   : > { %v2271_v12 = vsel %vm1282_vm4, %v1897_v1, %v1281_v51 }
 0x69e   : > { %v1899_v2 = vpop.eup %1898 }
 0x69f   : > { %v1154_v3 = vmul.f32 %v1899_v2, %v1891_v43 }
 0x6a1   : > { %v1155_v9 = vpack.c.bf16 %v1154_v3, %v1154_v3 }
 0x6aa   : > { %v1157_v6 = vpop.permute.xlu0 %1156 }
 0x6ab   : > { %v1162_v8 = vsel %vm702_vm3, %v1157_v6, 0 }
 0x6ac   : > { %1171 = vmatpush.bf16.msrb.mxu2 %v1162_v8 }
 0x6af   : > { %1748 = vmatmul.msk.bf16.vlgmr.msrb.gmra.mxu2 %vm665_vm2, %v1155_v9  ;;  %v1862_v9 = vld [vmem:[%s2383_s3] ss:$0 sm:$0xff] }
 0x6b0   : > { %1262 = vmatpush.bf16.msra.mxu2 %v2240_v15 }
 0x6b8   : > { %v1273_v13 = vpop.xlane.xlu1 %1272 }
 0x6b9   : > { %v1284_v14 = vmul.f32 %v2271_v12, %v1273_v13 }
 0x6bb   : > { %v2274_v16 = vsub.f32 %v1269_v52, %v1284_v14  ;;  %v1863_v14 = vld [vmem:[%s2384_s22] ss:$0 sm:$0xff] }
 0x6bd   : > { %v1288_v17 = vmul.f32 %v2274_v16, %v2274_v16 }
 0x6bf   : > { %v1290_v18 = vsel %vm632_vm1, %v1288_v17, 0.0 }
 0x6c3   : > { %1291 = vadd.xlane.f32.xlu2 %v1290_v18 }
 0x6f5   : > { %v1226_v20 = vpop.xlane.xlu2 %1225 }
 0x6f6   : > { %1900 = vrcp.f32 %v1226_v20 }
 0x6fc   : > { %v1901_v15 = vpop.eup %1900 }
 0x6fd   : > { %v1228_v21 = vmul.f32 %v1901_v15, %v1893_v57  ;;  %v1231_v22 = vpop.permute.xlu2 %1230  ;;  %v1814_v57 = vld [vmem:[%s2109_s24 + $0x38] sm:$0xff] }
 0x6fe   : > { %v1236_v23 = vsel %vm702_vm3, %v1231_v22, 0  ;;  %1443 = vmatpush.bf16.msrb.mxu1 %v1814_v57 }
 0x6ff   : > { %v1229_v24 = vpack.c.bf16 %v1228_v21, %v1228_v21  ;;  %1245 = vmatpush.bf16.msra.mxu3 %v1236_v23  ;;  %v1809_v23 = vld [vmem:[%s2109_s24 + $0x10] sm:$0xff] }
 0x702   : > { %1751 = vmatmul.msk.bf16.vlgmr.msra.gmra.mxu3 %vm665_vm2, %v1229_v24  ;;  %1444 = vmatpush.bf16.msrb.mxu1 %v1813_v61  ;;  %v1808_v24 = vld [vmem:[%s2109_s24 + $0x8] sm:$0xff] }
 0x706   : > { %1445 = vmatpush.bf16.msrb.mxu1 %v1812_v4 }
 0x70a   : > { %1446 = vmatpush.bf16.msrb.mxu1 %v1811_v0 }
 0x716   : > { %v1084_v25 = vpop.f32.mrf.mxu2 }
 0x717   : > { %v1088_v26 = vpack.c.bf16 %v1084_v25, %v1084_v25  ;;  %v1807_v25 = vld [vmem:[%s2109_s24] sm:$0xff] }
 0x719   : > { %1745 = vmatmul.msk.bf16.vlgmr.msra.gmra.mxu0 %vm665_vm2, %v1088_v26 }
 0x71e   : > { %v1086_v27 = vpop.f32.mrf.mxu2 }
 0x71f   : > { %v1864_v27 = vld [vmem:[%s593_s2] ss:$0 sm:$0xff] }
 0x732   : > { %v1173_v28 = vpop.f32.mrf.mxu2 }
 0x733   : > { %v1177_v29 = vpack.c.bf16 %v1173_v28, %v1173_v28 }
 0x735   : > { %1749 = vmatmul.msk.bf16.vlgmr.msrb.gmra.mxu0 %vm665_vm2, %v1177_v29 }
 0x736   : > { %v1292_v50 = vpop.xlane.xlu2 %1291 }
 0x737   : > { %v1296_v52 = vmul.f32 %v1292_v50, %v2271_v12 }
 0x739   : > { %v1298_v53 = vadd.f32 1e-05, %v1296_v52 }
 0x73a   : > { %v1175_v30 = vpop.f32.mrf.mxu2 }
 0x73b   : > { %1902 = vrsqrt.f32 %v1298_v53  ;;  %vm1306_vm6 = vweird.f32 %v1298_v53 }
 0x741   : > { %v1903_v54 = vpop.eup %1902 }
 0x742   : > { %v1301_v56 = vmul.f32 %v1903_v54, %v1298_v53  ;;  %vm1307_vm5 = vweird.f32 %v1903_v54 }
 0x743   : > { %vm1308_vm7 = vmor %vm1306_vm6, %vm1307_vm5 }
 0x744   : > { %v1302_v58 = vmul.f32 %v1903_v54, %v1301_v56 }
 0x746   : > { %v1303_v41 = vmul.f32 0.5, %v1302_v58 }
 0x748   : > { %v1304_v63 = vsub.f32 1.5, %v1303_v41 }
 0x74a   : > { %v1305_v2 = vmul.f32 %v1903_v54, %v1304_v63 }
 0x74c   : > { %v1309_v6 = vsel %vm1308_vm7, %v1903_v54, %v1305_v2 }
 0x74d   : > { %v1320_v11 = vmul.f32 %v1309_v6, %v2274_v16  ;;  %v1810_v16 = vld [vmem:[%s2109_s24 + $0x18] sm:$0xff] }
 0x74e   : > { %1447 = vmatpush.bf16.msrb.mxu1 %v1810_v16 }
 0x74f   : > { %v1326_v17 = vmul.f32 %v1862_v9, %v1320_v11 }
 0x751   : > { %v1332_v15 = vadd.f32 %v1863_v14, %v1326_v17 }
 0x752   : > { %1448 = vmatpush.bf16.msrb.mxu1 %v1809_v23 }
 0x756   : > { %1449 = vmatpush.bf16.msrb.mxu1 %v1808_v24 }
 0x75a   : > { %1450 = vmatpush.bf16.msrb.mxu1 %v1807_v25 }
 0x785   : > { %v1247_v31 = vpop.f32.mrf.mxu3 }
 0x786   : > { %v1251_v33 = vpack.c.bf16 %v1247_v31, %v1247_v31 }
 0x788   : > { %1752 = vmatmul.msk.bf16.vlgmr.msra.gmra.mxu2 %vm665_vm2, %v1251_v33 }
 0x78d   : > { %v1249_v34 = vpop.f32.mrf.mxu3 }
 0x796   : > { %v1101_v35 = vpop.f32.mrf.mxu0 }
 0x797   : > { %v1118_v37 = vadd.f32 %v2250_v32, %v1101_v35  ;;  %v1865_v35 = vld [vmem:[%s601_s23] ss:$0 sm:$0xff] }
 0x79e   : > { %v1103_v36 = vpop.f32.mrf.mxu0 }
 0x7b2   : > { %v1190_v38 = vpop.f32.mrf.mxu0 }
 0x7b3   : > { %v1194_v39 = vadd.f32 %v1190_v38, %v1118_v37 }
 0x7ba   : > { %v1192_v40 = vpop.f32.mrf.mxu0 }
 0x80b   : > { %v1264_v42 = vpop.f32.mrf.mxu2 }
 0x80c   : > { %v1268_v19 = vadd.f32 %v1264_v42, %v1194_v39 }
 0x80e   : > { %v1270_v44 = vadd.f32 %v1268_v19, %v2124_v5  ;;  %v1806_v5 = vld [vmem:[%s2099_s14 + $0x8] sm:$0xff] }
 0x80f   : > { %1364 = vmatpush.bf16.msra.mxu0 %v1806_v5 }
 0x810   : > { %v1274_v45 = vsel %vm632_vm1, %v1270_v44, 0.0 }
 0x811   : > { %1275 = vadd.xlane.f32.xlu0 %v1274_v45 }
 0x813   : > { %v1266_v46 = vpop.f32.mrf.mxu2  ;;  %1365 = vmatpush.bf16.msra.mxu0 %v1805_v55 }
 0x884   : > { %v1276_v47 = vpop.xlane.xlu0 %1275 }
 0x885   : > { %v1285_v48 = vmul.f32 %v2271_v12, %v1276_v47 }
 0x887   : > { %v1287_v43 = vsub.f32 %v1270_v44, %v1285_v48 }
 0x889   : > { %v1289_v49 = vmul.f32 %v1287_v43, %v1287_v43 }
 0x88b   : > { %v1293_v32 = vsel %vm632_vm1, %v1289_v49, 0.0 }
 0x88c   : > { %1294 = vadd.xlane.f32.xlu1 %v1293_v32 }
 0x8ff   : > { %v1295_v59 = vpop.xlane.xlu1 %1294 }
 0x900   : > { %v1297_v60 = vmul.f32 %v1295_v59, %v2271_v12 }
 0x902   : > { %v1299_v62 = vadd.f32 1e-05, %v1297_v60 }
 0x904   : > { %1904 = vrsqrt.f32 %v1299_v62  ;;  %vm1316_vm9 = vweird.f32 %v1299_v62 }
 0x90a   : > { %v1905_v1 = vpop.eup %1904 }
 0x90b   : > { %v1311_v10 = vmul.f32 %v1905_v1, %v1299_v62  ;;  %vm1317_vm8 = vweird.f32 %v1905_v1 }
 0x90c   : > { %vm1318_vm10 = vmor %vm1316_vm9, %vm1317_vm8 }
 0x90d   : > { %v1312_v3 = vmul.f32 %v1905_v1, %v1311_v10  ;;  %v1867_v10 = vld [vmem:[%s585_s29] ss:$0 sm:$0xff] }
 0x90f   : > { %v1313_v7 = vmul.f32 0.5, %v1312_v3 }
 0x911   : > { %v1314_v8 = vsub.f32 1.5, %v1313_v7 }
 0x913   : > { %v1315_v51 = vmul.f32 %v1905_v1, %v1314_v8 }
 0x915   : > { %v1319_v13 = vsel %vm1318_vm10, %v1905_v1, %v1315_v51  ;;  %v1866_v1 = vld [vmem:[%s582_s12] ss:$0 sm:$0xff] }
 0x916   : > { %v1321_v18 = vmul.f32 %v1319_v13, %v1287_v43 }
 0x918   : > { %v1327_v20 = vmul.f32 %v1862_v9, %v1321_v18 }
 0x91a   : > { %v1333_v21 = vadd.f32 %v1863_v14, %v1327_v20 }
 0x91c   : > { %v1334_v22 = vpack.c.bf16 %v1333_v21, %v1332_v15 }
 0x91e   : > { %1761 = vmatmul.msk.bf16.vlgmr.msra.gmra.mxu0 %vm632_vm1, %v1334_v22 }
 0x99b   : > { %v1367_v26 = vpop.f32.mrf.mxu0 }
 0x99c   : > { %v1368_v28 = vadd.f32 %v1864_v27, %v1367_v26 }
 0x99e   : > { %v1372_v31 = vmax.f32 %v1368_v28, 0.0 }
 0x9a3   : > { %v1369_v29 = vpop.f32.mrf.mxu0 }
 0x9a4   : > { %v1370_v30 = vadd.f32 %v1864_v27, %v1369_v29 }
 0x9a6   : > { %v1373_v33 = vmax.f32 %v1370_v30, 0.0 }
 0x9a8   : > { %v1374_v34 = vpack.c.bf16 %v1373_v33, %v1372_v31 }
 0x9aa   : > { %1451 = vmatmul.bf16.vlgmr.msrb.gmra.mxu1 %v1374_v34 }
 0xa27   : > { %v1452_v36 = vpop.f32.mrf.mxu1 }
 0xa28   : > { %v1453_v37 = vadd.f32 %v1865_v35, %v1452_v36 }
 0xa2a   : > { %v1457_v38 = vadd.f32 %v1453_v37, %v1332_v15 }
 0xa2c   : > { %v1459_v39 = vsel %vm632_vm1, %v1457_v38, 0.0 }
 0xa2d   : > { %1460 = vadd.xlane.f32.xlu1 %v1459_v39 }
 0xa2f   : > { %v1454_v40 = vpop.f32.mrf.mxu1 }
 0xa30   : > { %v1455_v42 = vadd.f32 %v1865_v35, %v1454_v40 }
 0xa32   : > { %v1458_v19 = vadd.f32 %v1455_v42, %v1333_v21 }
 0xa34   : > { %v1462_v44 = vsel %vm632_vm1, %v1458_v19, 0.0 }
 0xa35   : > { %1463 = vadd.xlane.f32.xlu0 %v1462_v44 }
 0xaa0   : > { %v1461_v45 = vpop.xlane.xlu1 %1460 }
 0xaa1   : > { %v1465_v46 = vmul.f32 %v1461_v45, %v2271_v12 }
 0xaa3   : > { %v1467_v47 = vsub.f32 %v1457_v38, %v1465_v46 }
 0xaa5   : > { %v1469_v48 = vmul.f32 %v1467_v47, %v1467_v47 }
 0xaa7   : > { %v1471_v43 = vsel %vm632_vm1, %v1469_v48, 0.0 }
 0xaa8   : > { %v1464_v49 = vpop.xlane.xlu0 %1463  ;;  %1472 = vadd.xlane.f32.xlu2 %v1471_v43 }
 0xaa9   : > { %v1466_v32 = vmul.f32 %v1464_v49, %v2271_v12 }
 0xaab   : > { %v1468_v50 = vsub.f32 %v1458_v19, %v1466_v32 }
 0xaad   : > { %v1470_v52 = vmul.f32 %v1468_v50, %v1468_v50 }
 0xaaf   : > { %v1474_v53 = vsel %vm632_vm1, %v1470_v52, 0.0 }
 0xab0   : > { %1475 = vadd.xlane.f32.xlu1 %v1474_v53 }
 0xb1b   : > { %v1473_v5 = vpop.xlane.xlu2 %1472 }
 0xb1c   : > { %v1477_v54 = vmul.f32 %v1473_v5, %v2271_v12 }
 0xb1e   : > { %v1479_v55 = vadd.f32 1e-05, %v1477_v54 }
 0xb20   : > { %1906 = vrsqrt.f32 %v1479_v55  ;;  %vm1487_vm12 = vweird.f32 %v1479_v55 }
 0xb23   : > { %v1476_v56 = vpop.xlane.xlu1 %1475 }
 0xb24   : > { %v1478_v57 = vmul.f32 %v1476_v56, %v2271_v12 }
 0xb26   : > { %v1907_v58 = vpop.eup %1906  ;;  %v1480_v59 = vadd.f32 1e-05, %v1478_v57 }
 0xb27   : > { %v1482_v60 = vmul.f32 %v1907_v58, %v1479_v55  ;;  %vm1488_vm11 = vweird.f32 %v1907_v58 }
 0xb28   : > { %1908 = vrsqrt.f32 %v1480_v59  ;;  %vm1489_vm13 = vmor %vm1487_vm12, %vm1488_vm11  ;;  %vm1497_vm15 = vweird.f32 %v1480_v59 }
 0xb29   : > { %v1483_v61 = vmul.f32 %v1907_v58, %v1482_v60 }
 0xb2b   : > { %v1484_v62 = vmul.f32 0.5, %v1483_v61 }
 0xb2d   : > { %v1485_v41 = vsub.f32 1.5, %v1484_v62 }
 0xb2e   : > { %v1909_v4 = vpop.eup %1908 }
 0xb2f   : > { %v1486_v63 = vmul.f32 %v1907_v58, %v1485_v41  ;;  %v1492_v0 = vmul.f32 %v1909_v4, %v1480_v59  ;;  %vm1498_vm14 = vweird.f32 %v1909_v4 }
 0xb30   : > { %vm1499_vm0 = vmor %vm1497_vm15, %vm1498_vm14 }
 0xb31   : > { %v1490_v12 = vsel %vm1489_vm13, %v1907_v58, %v1486_v63  ;;  %v1493_v2 = vmul.f32 %v1909_v4, %v1492_v0 }
 0xb32   : > { %v1501_v3 = vmul.f32 %v1490_v12, %v1467_v47 }
 0xb33   : > { %v1494_v6 = vmul.f32 0.5, %v1493_v2 }
 0xb34   : > { %v1507_v7 = vmul.f32 %v1866_v1, %v1501_v3 }
 0xb35   : > { %v1495_v8 = vsub.f32 1.5, %v1494_v6 }
 0xb36   : > { %v1513_v9 = vadd.f32 %v1867_v10, %v1507_v7 }
 0xb37   : > { %v1496_v11 = vmul.f32 %v1909_v4, %v1495_v8 }
 0xb38   : > { %1515 = vst.msk [vmem:[#allocation2] sm:$0xff] %vm632_vm1, %v1513_v9 }
 0xb39   : > { %v1500_v51 = vsel %vm1499_vm0, %v1909_v4, %v1496_v11 }
 0xb3a   : > { %v1502_v13 = vmul.f32 %v1500_v51, %v1468_v50 }
 0xb3c   : > { %v1508_v14 = vmul.f32 %v1866_v1, %v1502_v13  ;;  %1520 = sbr.rel (%p1794_p6) target bundleno = 2883 (0xb43), region = 76 }
 0xb3e   : > { %v1514_v17 = vadd.f32 %v1867_v10, %v1508_v14 }
 0xb40   : > { %1516 = vst.msk [vmem:[#allocation2 + $0x8] sm:$0xff] %vm632_vm1, %v1514_v17 }
 0xb41   : > { %1521 = vst.msk [vmem:[#allocation3] sm:$0xff] %vm632_vm1, %v1513_v9 }
 0xb42   : > { %1522 = vst.msk [vmem:[#allocation3 + $0x8] sm:$0xff] %vm632_vm1, %v1514_v17 }
 0xb43 PF: > { %s2385_s12 = sld [smem:[#allocation7_spill]]  ;;  %s1978_s18 = smov [#allocation3]  }
 0xb44   : > { %s2387_s20 = sld [smem:[#allocation11_spill]]  ;;  %s1531_s14 = sshll.u32 %s1978_s18, 4  ;;  %s1532_s14 = int_to_ptr.vmem [resolvable:$true] %s1531_s14 }
 0xb45   : > { %s1979_s3 = smov 128   ;;  %s1980_s17 = smov 8  }
 0xb49   : > { %s2386_s26 = sadd.s32 4294967295, %s2385_s12  }
 0xb4a   : > { %p1819_p7 = scmp.eq.s32.totalorder %s2386_s26, 1  ;;  %s1533_s15 = sshll.u32 %s2387_s20, 4  ;;  %s1534_s15 = int_to_ptr.hbm [resolvable:$true] %s1533_s15 }
 0xb4c   : > { %1816 = dma.vmem_to_hbm [thread:$0]  (%p1819_p7), %s1532_s14, 256, %s1534_s15, [#allocation4], %s1979_s3, %s1979_s3, %s1980_s17  }
 0xb4d   : > { %1951 = dma.done.wait (%p1819_p7), [#allocation4], 256  }
 0xb4e   : > { %1953 = vsyncadd (%p1819_p7), [#allocation4], 4294967040 }
 0xb4f PF: > { %s2388_s21 = sld [smem:[#allocation7_spill]] }
 0xb50   : > { %s2390_s22 = sld [smem:[#allocation8_spill]] }
 0xb55   : > { %s23_s23 = sadd.s32 1, %s2388_s21   ;;  %s2389_s21 = sld [smem:[#allocation6_spill]] }
 0xb56   : > { %p20_p8 = scmp.ge.s32.totalorder %s23_s23, 4  }
 0xb58   :  { %22 = sbr.rel (!%p20_p8) target bundleno = 6 (0x6), region = 138 }
 0xb5d   :  { %1550 = vsyncpa [#allocation4], 1 }
 0xb5e   :  { %1552 = vsyncpa [#allocation4 + $0x1], 1 }

</bundles_post_ra>
